<compile_context>
chip_gen: v6e
topology: v6e:2x2x1
jax: 0.10.0
libtpu: 0.0.40
codegen_flags: <defaults>
</compile_context>

<pallas_src>
import functools

import jax
import jax.numpy as jnp
from jax.experimental import pallas as pl
from jax.experimental.pallas import tpu as pltpu

LANE = 128          # MXU / lane width
SUB = 16            # bf16 sublane packing (16 rows per sublane tile)


# ----------------------------------------------------------------------------
# Helpers
# ----------------------------------------------------------------------------
def _round_up(x, m):
    return (x + m - 1) // m * m


def _choose_tile(m, target, align=SUB):
    """Pick an M tile (multiple of `align`) and the padded extent it divides.

    Guarantees at least 2 tiles whenever the padded extent allows it so the
    "parallel" grid axis produces work for both v7x TensorCores; harmless on
    single-TC v5e/v6e.
    """
    mp = _round_up(m, align)
    if mp > target:
        return target, _round_up(m, target)
    if mp >= 2 * align:
        tm = _round_up((mp + 1) // 2, align)      # ~half, align-rounded
        return tm, _round_up(m, tm)
    return mp, mp


def _spec(shape, index_map, *, invariant=False):
    """BlockSpec; grid-invariant operands are single-buffered to save VMEM."""
    if invariant:
        try:
            return pl.BlockSpec(shape, index_map, pipeline_mode=pl.Buffered(1))
        except (TypeError, AttributeError):       # older API without pipeline_mode
            return pl.BlockSpec(shape, index_map)
    return pl.BlockSpec(shape, index_map)


_COMPILER_PARAMS = pltpu.CompilerParams(
    dimension_semantics=("parallel",),            # megacore-splittable M tiles
    vmem_limit_bytes=32 * 1024 * 1024,            # safe on v5e/v6e/v7x
)


# ----------------------------------------------------------------------------
# Pallas kernels
# ----------------------------------------------------------------------------
def _gemm_bias_relu_kernel(x_ref, w_ref, b_ref, o_ref):
    """o = relu(x @ w + b); bf16 MXU inputs, f32 accumulation."""
    y = jnp.dot(x_ref[...], w_ref[...], preferred_element_type=jnp.float32)
    o_ref[...] = jnp.maximum(y + b_ref[...], 0.0).astype(o_ref.dtype)


def _tail_kernel(x_ref, w3_ref, b3_ref, w4_ref, b4_ref, w5_ref, b5_ref,
                 wh_ref, bh_ref, o_ref, *, n_actions, npix):
    """Fused conv3 -> fc4 -> fc5 -> dueling head.

    x_ref:  (npix, tb, Kc3)  conv3 patches, pixel-major.
    w3_ref: (Kc3, 128)       conv3 weight (lane-padded output channels).
    w4_ref: (npix, 128, 512) fc4 weight, split into per-pixel chunks so the
                             (tb, npix*128) flatten never materializes.
    Everything downstream of the conv2 output stays in VMEM.
    """
    tb = x_ref.shape[1]
    h4 = jnp.zeros((tb, w4_ref.shape[2]), jnp.float32)
    for p in range(npix):                                   # static unroll
        hp = jnp.dot(x_ref[p], w3_ref[...], preferred_element_type=jnp.float32)
        hp = jnp.maximum(hp + b3_ref[...], 0.0).astype(w4_ref.dtype)
        h4 = h4 + jnp.dot(hp, w4_ref[p], preferred_element_type=jnp.float32)
    h = jnp.maximum(h4 + b4_ref[...], 0.0).astype(w5_ref.dtype)
    h = jnp.dot(h, w5_ref[...], preferred_element_type=jnp.float32)
    h = jnp.maximum(h + b5_ref[...], 0.0).astype(wh_ref.dtype)
    # One lane-dense head matmul: columns [0, A) = advantage, column A = value,
    # remaining columns are zero padding (zero weights and bias).
    y = jnp.dot(h, wh_ref[...], preferred_element_type=jnp.float32) + bh_ref[...]
    col = jax.lax.broadcasted_iota(jnp.int32, y.shape, 1)
    adv_sum = jnp.sum(jnp.where(col < n_actions, y, 0.0), axis=1, keepdims=True)
    val = jnp.sum(jnp.where(col == n_actions, y, 0.0), axis=1, keepdims=True)
    # Only columns < n_actions are meaningful; the wrapper slices them out.
    o_ref[...] = val + y - adv_sum * (1.0 / n_actions)


# ----------------------------------------------------------------------------
# Pallas wrappers
# ----------------------------------------------------------------------------
def pallas_gemm_bias_relu(x, w, b, *, tm_target=1024):
    """x: (M, Kp) bf16, w: (Kp, Np) bf16, b: (1, Np) f32 -> (M, Np) bf16."""
    M, Kp = x.shape
    Np = w.shape[1]
    tm, Mp = _choose_tile(M, tm_target)
    if Mp != M:
        x = jnp.pad(x, ((0, Mp - M), (0, 0)))
    cost = pl.CostEstimate(
        flops=2 * Mp * Kp * Np,
        transcendentals=0,
        bytes_accessed=Mp * Kp * 2 + Kp * Np * 2 + Np * 4 + Mp * Np * 2)
    out = pl.pallas_call(
        _gemm_bias_relu_kernel,
        out_shape=jax.ShapeDtypeStruct((Mp, Np), jnp.bfloat16),
        grid=(Mp // tm,),
        in_specs=[
            pl.BlockSpec((tm, Kp), lambda i: (i, 0)),
            _spec((Kp, Np), lambda i: (0, 0), invariant=True),
            _spec((1, Np), lambda i: (0, 0), invariant=True),
        ],
        out_specs=pl.BlockSpec((tm, Np), lambda i: (i, 0)),
        compiler_params=_COMPILER_PARAMS,
        cost_estimate=cost,
    )(x, w, b)
    return out[:M] if Mp != M else out


def pallas_conv3_fc_dueling(patches, p, n_actions, *, tb_target=256):
    """patches: (npix, B, Kc3) bf16 -> (B, 128) f32 (first n_actions cols valid)."""
    npix, B, Kc3 = patches.shape
    tb, Bp = _choose_tile(B, tb_target)
    if Bp != B:
        patches = jnp.pad(patches, ((0, 0), (0, Bp - B), (0, 0)))
    w3, b3 = p["c3_w"], p["c3_b"]
    w4, b4 = p["fc4_w"], p["fc4_b"]
    w5, b5 = p["fc5_w"], p["fc5_b"]
    wh, bh = p["head_w"], p["head_b"]
    H4, H5, NH = w4.shape[2], w5.shape[1], wh.shape[1]
    flops = 2 * Bp * (npix * Kc3 * LANE + npix * LANE * H4 + H4 * H5 + H5 * NH)
    bytes_acc = (npix * Bp * Kc3 * 2 + w3.size * 2 + w4.size * 2
                 + w5.size * 2 + wh.size * 2 + Bp * NH * 4)
    out = pl.pallas_call(
        functools.partial(_tail_kernel, n_actions=n_actions, npix=npix),
        out_shape=jax.ShapeDtypeStruct((Bp, NH), jnp.float32),
        grid=(Bp // tb,),
        in_specs=[
            pl.BlockSpec((npix, tb, Kc3), lambda i: (0, i, 0)),
            _spec((Kc3, LANE), lambda i: (0, 0), invariant=True),
            _spec((1, LANE), lambda i: (0, 0), invariant=True),
            _spec((npix, LANE, H4), lambda i: (0, 0, 0), invariant=True),
            _spec((1, H4), lambda i: (0, 0), invariant=True),
            _spec((H4, H5), lambda i: (0, 0), invariant=True),
            _spec((1, H5), lambda i: (0, 0), invariant=True),
            _spec((H5, NH), lambda i: (0, 0), invariant=True),
            _spec((1, NH), lambda i: (0, 0), invariant=True),
        ],
        out_specs=pl.BlockSpec((tb, NH), lambda i: (i, 0)),
        compiler_params=_COMPILER_PARAMS,
        cost_estimate=pl.CostEstimate(flops=flops, transcendentals=0,
                                      bytes_accessed=bytes_acc),
    )(patches, w3, b3, w4, b4, w5, b5, wh, bh)
    return out[:B] if Bp != B else out


# ----------------------------------------------------------------------------
# Conv layers = NHWC im2col (XLA glue) + Pallas GEMM
# ----------------------------------------------------------------------------
def _im2col_nhwc(x, ksize, stride):
    """x: (B, H, W, C) -> patch tensor (B, OH, OW, K*K*C) in (kh, kw, c) order."""
    B, H, W, C = x.shape
    OH = (H - ksize) // stride + 1
    OW = (W - ksize) // stride + 1
    cols = []
    for kh in range(ksize):
        for kw in range(ksize):
            sl = x[:, kh:kh + stride * OH:stride, kw:kw + stride * OW:stride, :]
            cols.append(sl[:, :OH, :OW, :])
    return jnp.concatenate(cols, axis=-1), OH, OW


def conv2d_relu_nhwc(x, w_pad, b_pad, *, ksize, stride, real_in):
    """x: (B, H, W, >=real_in) bf16 -> ((B, OH, OW, 128) bf16, OH, OW)."""
    if x.shape[-1] > real_in:
        x = x[..., :real_in]                 # drop lane padding before im2col
    p4, OH, OW = _im2col_nhwc(x, ksize, stride)
    patches = p4.reshape(x.shape[0] * OH * OW, -1)
    k_real = patches.shape[1]
    k_pad = w_pad.shape[0]
    if k_pad != k_real:                      # 16-granular K padding only
        patches = jnp.pad(patches, ((0, 0), (0, k_pad - k_real)))
    y = pallas_gemm_bias_relu(patches, w_pad, b_pad)       # (M, 128) bf16
    return y.reshape(x.shape[0], OH, OW, w_pad.shape[1]), OH, OW


def conv3_patches_pixel_major(x, k_pad, *, ksize, stride, real_in):
    """Conv3 patches reshaped to (npix, B, Kc3) for the fused tail kernel."""
    if x.shape[-1] > real_in:
        x = x[..., :real_in]
    p4, OH, OW = _im2col_nhwc(x, ksize, stride)
    B = x.shape[0]
    npix = OH * OW
    k_real = p4.shape[-1]
    patches = jnp.transpose(p4.reshape(B, npix, k_real), (1, 0, 2))
    if k_pad != k_real:
        patches = jnp.pad(patches, ((0, 0), (0, 0), (0, k_pad - k_real)))
    return patches, OH, OW


# ----------------------------------------------------------------------------
# Parameters
# ----------------------------------------------------------------------------
def conv_out_size(n, k, s, p=0):
    return (n + 2 * p - k) // s + 1


def init_params(key, in_dims, in_channels=3, n_actions=9):
    """Raw parameters in PyTorch layout (OIHW convs, (out, in) linears)."""
    convh = conv_out_size(conv_out_size(conv_out_size(in_dims[0], 7, 4), 3, 2), 3, 1)
    convw = conv_out_size(conv_out_size(conv_out_size(in_dims[1], 7, 4), 3, 2), 3, 1)
    flat = 64 * convh * convw
    ks = jax.random.split(key, 14)
    s = 0.05
    return {
        "c1_w": s * jax.random.normal(ks[0], (32, in_channels, 7, 7), jnp.float32),
        "c1_b": s * jax.random.normal(ks[1], (32,), jnp.float32),
        "c2_w": s * jax.random.normal(ks[2], (64, 32, 3, 3), jnp.float32),
        "c2_b": s * jax.random.normal(ks[3], (64,), jnp.float32),
        "c3_w": s * jax.random.normal(ks[4], (64, 64, 3, 3), jnp.float32),
        "c3_b": s * jax.random.normal(ks[5], (64,), jnp.float32),
        "fc4_w": s * jax.random.normal(ks[6], (512, flat), jnp.float32),
        "fc4_b": s * jax.random.normal(ks[7], (512,), jnp.float32),
        "fc5_w": s * jax.random.normal(ks[8], (128, 512), jnp.float32),
        "fc5_b": s * jax.random.normal(ks[9], (128,), jnp.float32),
        "val_w": s * jax.random.normal(ks[10], (1, 128), jnp.float32),
        "val_b": s * jax.random.normal(ks[11], (1,), jnp.float32),
        "adv_w": s * jax.random.normal(ks[12], (n_actions, 128), jnp.float32),
        "adv_b": s * jax.random.normal(ks[13], (n_actions,), jnp.float32),
    }


def prepare_params(p, in_dims, n_actions):
    """One-time layout work so the forward pass does zero weight reshuffling.

    * conv weights -> (Kpad16, 128) bf16, rows in (kh, kw, c) order, K padded
      only to a multiple of 16 (bf16 sublane); 1/255 folded into conv1.
    * fc4 weight rows permuted to the NHWC(+padded-channel) flatten order and
      split into per-pixel (128, 512) chunks, so the fused kernel never builds
      the flatten and never transposes conv activations back to NCHW.
    * adv/val heads concatenated and lane-padded into one (128, 128) matrix.
    """
    def prep_conv(w, b, scale=1.0):
        o, c, k, _ = w.shape
        kkc = k * k * c
        wt = (w * scale).transpose(0, 2, 3, 1).reshape(o, kkc)     # (o, kh*kw*c)
        k_pad = _round_up(kkc, SUB)
        n_pad = _round_up(o, LANE)
        wt = jnp.pad(wt, ((0, n_pad - o), (0, k_pad - kkc))).T     # (Kpad, Npad)
        bp = jnp.pad(b, (0, n_pad - o)).reshape(1, n_pad)
        return wt.astype(jnp.bfloat16), bp.astype(jnp.float32)

    h3 = conv_out_size(conv_out_size(conv_out_size(in_dims[0], 7, 4), 3, 2), 3, 1)
    w3 = conv_out_size(conv_out_size(conv_out_size(in_dims[1], 7, 4), 3, 2), 3, 1)
    npix = h3 * w3

    c1_w, c1_b = prep_conv(p["c1_w"], p["c1_b"], scale=1.0 / 255.0)
    c2_w, c2_b = prep_conv(p["c2_w"], p["c2_b"])
    c3_w, c3_b = prep_conv(p["c3_w"], p["c3_b"])

    # fc4: absorb NCHW flatten + NHWC layout + channel padding (zero rows),
    # then split into per-pixel 128-row chunks for the fused tail kernel.
    f4 = p["fc4_w"].reshape(512, 64, h3, w3).transpose(0, 2, 3, 1)  # (512,h,w,c)
    f4 = jnp.pad(f4, ((0, 0), (0, 0), (0, 0), (0, LANE - 64)))
    f4 = f4.reshape(512, npix * LANE).T                             # (Dp, 512)
    f4 = f4.reshape(npix, LANE, 512)                                # (npix,128,512)

    f5 = p["fc5_w"].T                                               # (512, 128)

    head_w = jnp.concatenate([p["adv_w"].T, p["val_w"].T], axis=1)  # (128, A+1)
    head_w = jnp.pad(head_w, ((0, 0), (0, LANE - (n_actions + 1))))
    head_b = jnp.pad(jnp.concatenate([p["adv_b"], p["val_b"]]),
                     (0, LANE - (n_actions + 1))).reshape(1, LANE)

    return {
        "c1_w": c1_w, "c1_b": c1_b,
        "c2_w": c2_w, "c2_b": c2_b,
        "c3_w": c3_w, "c3_b": c3_b,
        "fc4_w": f4.astype(jnp.bfloat16),
        "fc4_b": p["fc4_b"].reshape(1, 512).astype(jnp.float32),
        "fc5_w": f5.astype(jnp.bfloat16),
        "fc5_b": p["fc5_b"].reshape(1, 128).astype(jnp.float32),
        "head_w": head_w.astype(jnp.bfloat16),
        "head_b": head_b.astype(jnp.float32),
    }


# ----------------------------------------------------------------------------
# Forward
# ----------------------------------------------------------------------------
@functools.partial(jax.jit, static_argnames=("n_actions",))
def dueling_dqn_forward(x, pp, n_actions=9):
    """Pallas forward.  x: (B, C, H, W) float with values in [0, 255]."""
    # NCHW -> NHWC once; integers 0..255 are exact in bf16, /255 lives in c1_w.
    h = jnp.transpose(x, (0, 2, 3, 1)).astype(jnp.bfloat16)
    h, _, _ = conv2d_relu_nhwc(h, pp["c1_w"], pp["c1_b"], ksize=7, stride=4,
                               real_in=x.shape[1])
    h, _, _ = conv2d_relu_nhwc(h, pp["c2_w"], pp["c2_b"], ksize=3, stride=2,
                               real_in=32)
    patches, _, _ = conv3_patches_pixel_major(h, pp["c3_w"].shape[0],
                                              ksize=3, stride=1, real_in=64)
    q = pallas_conv3_fc_dueling(patches, pp, n_actions)   # (B, 128) lane-dense
    return q[:, :n_actions]


# Plain-JAX reference (numerical sanity check only).
def reference_forward(x, p):
    x = x.astype(jnp.float32) / 255.0

    def conv(x, w, b, s):
        y = jax.lax.conv_general_dilated(
            x, w, window_strides=(s, s), padding="VALID",
            dimension_numbers=("NCHW", "OIHW", "NCHW"),
            precision=jax.lax.Precision.HIGHEST)
        return jax.nn.relu(y + b[None, :, None, None])

    x = conv(x, p["c1_w"], p["c1_b"], 4)
    x = conv(x, p["c2_w"], p["c2_b"], 2)
    x = conv(x, p["c3_w"], p["c3_b"], 1)
    x = x.reshape(x.shape[0], -1)
    x = jax.nn.relu(x @ p["fc4_w"].T + p["fc4_b"])
    x = jax.nn.relu(x @ p["fc5_w"].T + p["fc5_b"])
    adv = x @ p["adv_w"].T + p["adv_b"]
    val = x @ p["val_w"].T + p["val_b"]
    return val + adv - adv.mean(1, keepdims=True)


if __name__ == "__main__":
    B, C, H, W = 2, 3, 44, 44     # conv stack -> 2x2 spatial, 64 channels
    n_actions = 9

    key = jax.random.PRNGKey(0)
    k_x, k_p = jax.random.split(key)
    x = jax.random.randint(k_x, (B, C, H, W), 0, 256).astype(jnp.float32)
    raw_params = init_params(k_p, (H, W), in_channels=C, n_actions=n_actions)
    params = prepare_params(raw_params, (H, W), n_actions)

    out = jax.block_until_ready(dueling_dqn_forward(x, params, n_actions=n_actions))
    assert out.shape == (B, n_actions), out.shape

    ref = jax.block_until_ready(reference_forward(x, raw_params))
    max_err = float(jnp.max(jnp.abs(out - ref)))
    # bf16 MXU inputs with f32 accumulation -> small deviation vs f32 reference.
    assert jnp.allclose(out, ref, rtol=2e-2, atol=1e-2), max_err

    print("KERNEL_OK")
</pallas_src>

<mosaic_0001>
module attributes {stable_mosaic.version = 11 : i64} {
  func.func @_gemm_bias_relu_kernel(%arg0: i32, %arg1: memref<112x160xbf16, #tpu.memory_space<vmem>>, %arg2: memref<160x128xbf16, #tpu.memory_space<vmem>>, %arg3: memref<1x128xf32, #tpu.memory_space<vmem>>, %arg4: memref<112x128xbf16, #tpu.memory_space<vmem>>) attributes {dimension_semantics = [#tpu.dimension_semantics<parallel>], iteration_bounds = array<i64: 2>, scalar_prefetch = 0 : i64, scratch_operands = 0 : i64, tpu.core_type = #tpu.core_type<tc>, window_params = [{transform_indices = @transform_0, window_bounds = array<i64: 112, 160>}, {pipeline_mode = #tpu.pipeline_mode<synchronous>, transform_indices = @transform_1, window_bounds = array<i64: 160, 128>}, {pipeline_mode = #tpu.pipeline_mode<synchronous>, transform_indices = @transform_2, window_bounds = array<i64: 1, 128>}, {transform_indices = @transform_3, window_bounds = array<i64: 112, 128>}]} {
    %c0 = arith.constant 0 : index
    %c0_0 = arith.constant 0 : index
    %0 = vector.load %arg1[%c0, %c0_0] : memref<112x160xbf16, #tpu.memory_space<vmem>>, vector<112x160xbf16>
    %c0_1 = arith.constant 0 : index
    %c0_2 = arith.constant 0 : index
    %1 = vector.load %arg2[%c0_1, %c0_2] : memref<160x128xbf16, #tpu.memory_space<vmem>>, vector<160x128xbf16>
    %cst = arith.constant dense<0.000000e+00> : vector<112x128xf32>
    %2 = tpu.matmul %0, %1, %cst {dimension_numbers = #tpu.dot_dimension_numbers<[1], [0], [0], [1], [0, 0, 1, 1], [], []>} : vector<112x160xbf16>, vector<160x128xbf16>, vector<112x128xf32> -> vector<112x128xf32>
    %c0_3 = arith.constant 0 : index
    %c0_4 = arith.constant 0 : index
    %3 = vector.load %arg3[%c0_3, %c0_4] : memref<1x128xf32, #tpu.memory_space<vmem>>, vector<1x128xf32>
    %4 = vector.broadcast %3 : vector<1x128xf32> to vector<112x128xf32>
    %5 = arith.addf %2, %4 : vector<112x128xf32>
    %cst_5 = arith.constant 0.000000e+00 : f32
    %6 = vector.broadcast %cst_5 : f32 to vector<112x128xf32>
    %7 = arith.maximumf %5, %6 : vector<112x128xf32>
    %8 = arith.truncf %7 : vector<112x128xf32> to vector<112x128xbf16>
    %c0_6 = arith.constant 0 : index
    %c0_7 = arith.constant 0 : index
    %9 = vector.load %arg4[%c0_6, %c0_7] : memref<112x128xbf16, #tpu.memory_space<vmem>>, vector<112x128xbf16>
    tpu.vector_store %arg4[%c0_6, %c0_7], %8 {strides = array<i32>} : memref<112x128xbf16, #tpu.memory_space<vmem>>, vector<112x128xbf16>,
    return
  }
  func.func @transform_0(%arg0: i32) -> (i32, i32) {
    %c0_i32 = arith.constant 0 : i32
    %c0_i32_0 = arith.constant 0 : i32
    return %arg0, %c0_i32 : i32, i32
  }
  func.func @transform_1(%arg0: i32) -> (i32, i32) {
    %c0_i32 = arith.constant 0 : i32
    %c0_i32_0 = arith.constant 0 : i32
    %c0_i32_1 = arith.constant 0 : i32
    return %c0_i32, %c0_i32_0 : i32, i32
  }
  func.func @transform_2(%arg0: i32) -> (i32, i32) {
    %c0_i32 = arith.constant 0 : i32
    %c0_i32_0 = arith.constant 0 : i32
    %c0_i32_1 = arith.constant 0 : i32
    return %c0_i32, %c0_i32_0 : i32, i32
  }
  func.func @transform_3(%arg0: i32) -> (i32, i32) {
    %c0_i32 = arith.constant 0 : i32
    %c0_i32_0 = arith.constant 0 : i32
    return %arg0, %c0_i32 : i32, i32
  }
}

module attributes {stable_mosaic.version = 11 : i64} {
  func.func @_gemm_bias_relu_kernel(%arg0: i32, %arg1: memref<16x288xbf16, #tpu.memory_space<vmem>>, %arg2: memref<288x128xbf16, #tpu.memory_space<vmem>>, %arg3: memref<1x128xf32, #tpu.memory_space<vmem>>, %arg4: memref<16x128xbf16, #tpu.memory_space<vmem>>) attributes {dimension_semantics = [#tpu.dimension_semantics<parallel>], iteration_bounds = array<i64: 2>, scalar_prefetch = 0 : i64, scratch_operands = 0 : i64, tpu.core_type = #tpu.core_type<tc>, window_params = [{transform_indices = @transform_0, window_bounds = array<i64: 16, 288>}, {pipeline_mode = #tpu.pipeline_mode<synchronous>, transform_indices = @transform_1, window_bounds = array<i64: 288, 128>}, {pipeline_mode = #tpu.pipeline_mode<synchronous>, transform_indices = @transform_2, window_bounds = array<i64: 1, 128>}, {transform_indices = @transform_3, window_bounds = array<i64: 16, 128>}]} {
    %c0 = arith.constant 0 : index
    %c0_0 = arith.constant 0 : index
    %0 = vector.load %arg1[%c0, %c0_0] : memref<16x288xbf16, #tpu.memory_space<vmem>>, vector<16x288xbf16>
    %c0_1 = arith.constant 0 : index
    %c0_2 = arith.constant 0 : index
    %1 = vector.load %arg2[%c0_1, %c0_2] : memref<288x128xbf16, #tpu.memory_space<vmem>>, vector<288x128xbf16>
    %cst = arith.constant dense<0.000000e+00> : vector<16x128xf32>
    %2 = tpu.matmul %0, %1, %cst {dimension_numbers = #tpu.dot_dimension_numbers<[1], [0], [0], [1], [0, 0, 1, 1], [], []>} : vector<16x288xbf16>, vector<288x128xbf16>, vector<16x128xf32> -> vector<16x128xf32>
    %c0_3 = arith.constant 0 : index
    %c0_4 = arith.constant 0 : index
    %3 = vector.load %arg3[%c0_3, %c0_4] : memref<1x128xf32, #tpu.memory_space<vmem>>, vector<1x128xf32>
    %4 = vector.broadcast %3 : vector<1x128xf32> to vector<16x128xf32>
    %5 = arith.addf %2, %4 : vector<16x128xf32>
    %cst_5 = arith.constant 0.000000e+00 : f32
    %6 = vector.broadcast %cst_5 : f32 to vector<16x128xf32>
    %7 = arith.maximumf %5, %6 : vector<16x128xf32>
    %8 = arith.truncf %7 : vector<16x128xf32> to vector<16x128xbf16>
    %c0_6 = arith.constant 0 : index
    %c0_7 = arith.constant 0 : index
    %9 = vector.load %arg4[%c0_6, %c0_7] : memref<16x128xbf16, #tpu.memory_space<vmem>>, vector<16x128xbf16>
    tpu.vector_store %arg4[%c0_6, %c0_7], %8 {strides = array<i32>} : memref<16x128xbf16, #tpu.memory_space<vmem>>, vector<16x128xbf16>,
    return
  }
  func.func @transform_0(%arg0: i32) -> (i32, i32) {
    %c0_i32 = arith.constant 0 : i32
    %c0_i32_0 = arith.constant 0 : i32
    return %arg0, %c0_i32 : i32, i32
  }
  func.func @transform_1(%arg0: i32) -> (i32, i32) {
    %c0_i32 = arith.constant 0 : i32
    %c0_i32_0 = arith.constant 0 : i32
    %c0_i32_1 = arith.constant 0 : i32
    return %c0_i32, %c0_i32_0 : i32, i32
  }
  func.func @transform_2(%arg0: i32) -> (i32, i32) {
    %c0_i32 = arith.constant 0 : i32
    %c0_i32_0 = arith.constant 0 : i32
    %c0_i32_1 = arith.constant 0 : i32
    return %c0_i32, %c0_i32_0 : i32, i32
  }
  func.func @transform_3(%arg0: i32) -> (i32, i32) {
    %c0_i32 = arith.constant 0 : i32
    %c0_i32_0 = arith.constant 0 : i32
    return %arg0, %c0_i32 : i32, i32
  }
}

module attributes {stable_mosaic.version = 11 : i64} {
  func.func @_tail_kernel(%arg0: i32, %arg1: memref<4x16x576xbf16, #tpu.memory_space<vmem>>, %arg2: memref<576x128xbf16, #tpu.memory_space<vmem>>, %arg3: memref<1x128xf32, #tpu.memory_space<vmem>>, %arg4: memref<4x128x512xbf16, #tpu.memory_space<vmem>>, %arg5: memref<1x512xf32, #tpu.memory_space<vmem>>, %arg6: memref<512x128xbf16, #tpu.memory_space<vmem>>, %arg7: memref<1x128xf32, #tpu.memory_space<vmem>>, %arg8: memref<128x128xbf16, #tpu.memory_space<vmem>>, %arg9: memref<1x128xf32, #tpu.memory_space<vmem>>, %arg10: memref<16x128xf32, #tpu.memory_space<vmem>>) attributes {dimension_semantics = [#tpu.dimension_semantics<parallel>], iteration_bounds = array<i64: 1>, scalar_prefetch = 0 : i64, scratch_operands = 0 : i64, tpu.core_type = #tpu.core_type<tc>, window_params = [{transform_indices = @transform_0, window_bounds = array<i64: 4, 16, 576>}, {pipeline_mode = #tpu.pipeline_mode<synchronous>, transform_indices = @transform_1, window_bounds = array<i64: 576, 128>}, {pipeline_mode = #tpu.pipeline_mode<synchronous>, transform_indices = @transform_2, window_bounds = array<i64: 1, 128>}, {pipeline_mode = #tpu.pipeline_mode<synchronous>, transform_indices = @transform_3, window_bounds = array<i64: 4, 128, 512>}, {pipeline_mode = #tpu.pipeline_mode<synchronous>, transform_indices = @transform_4, window_bounds = array<i64: 1, 512>}, {pipeline_mode = #tpu.pipeline_mode<synchronous>, transform_indices = @transform_5, window_bounds = array<i64: 512, 128>}, {pipeline_mode = #tpu.pipeline_mode<synchronous>, transform_indices = @transform_6, window_bounds = array<i64: 1, 128>}, {pipeline_mode = #tpu.pipeline_mode<synchronous>, transform_indices = @transform_7, window_bounds = array<i64: 128, 128>}, {pipeline_mode = #tpu.pipeline_mode<synchronous>, transform_indices = @transform_8, window_bounds = array<i64: 1, 128>}, {transform_indices = @transform_9, window_bounds = array<i64: 16, 128>}]} {
    %cst = arith.constant 0.000000e+00 : f32
    %0 = vector.broadcast %cst : f32 to vector<16x512xf32>
    %c0 = arith.constant 0 : index
    %c0_0 = arith.constant 0 : index
    %c0_1 = arith.constant 0 : index
    %1 = vector.load %arg1[%c0, %c0_0, %c0_1] : memref<4x16x576xbf16, #tpu.memory_space<vmem>>, vector<1x16x576xbf16>
    %2 = vector.shape_cast %1 : vector<1x16x576xbf16> to vector<16x576xbf16>
    %c0_2 = arith.constant 0 : index
    %c0_3 = arith.constant 0 : index
    %3 = vector.load %arg2[%c0_2, %c0_3] : memref<576x128xbf16, #tpu.memory_space<vmem>>, vector<576x128xbf16>
    %cst_4 = arith.constant dense<0.000000e+00> : vector<16x128xf32>
    %4 = tpu.matmul %2, %3, %cst_4 {dimension_numbers = #tpu.dot_dimension_numbers<[1], [0], [0], [1], [0, 0, 1, 1], [], []>} : vector<16x576xbf16>, vector<576x128xbf16>, vector<16x128xf32> -> vector<16x128xf32>
    %c0_5 = arith.constant 0 : index
    %c0_6 = arith.constant 0 : index
    %5 = vector.load %arg3[%c0_5, %c0_6] : memref<1x128xf32, #tpu.memory_space<vmem>>, vector<1x128xf32>
    %6 = vector.broadcast %5 : vector<1x128xf32> to vector<16x128xf32>
    %7 = arith.addf %4, %6 : vector<16x128xf32>
    %cst_7 = arith.constant 0.000000e+00 : f32
    %8 = vector.broadcast %cst_7 : f32 to vector<16x128xf32>
    %9 = arith.maximumf %7, %8 : vector<16x128xf32>
    %10 = arith.truncf %9 : vector<16x128xf32> to vector<16x128xbf16>
    %c0_8 = arith.constant 0 : index
    %c0_9 = arith.constant 0 : index
    %c0_10 = arith.constant 0 : index
    %11 = vector.load %arg4[%c0_8, %c0_9, %c0_10] : memref<4x128x512xbf16, #tpu.memory_space<vmem>>, vector<1x128x512xbf16>
    %12 = vector.shape_cast %11 : vector<1x128x512xbf16> to vector<128x512xbf16>
    %cst_11 = arith.constant dense<0.000000e+00> : vector<16x512xf32>
    %13 = tpu.matmul %10, %12, %cst_11 {dimension_numbers = #tpu.dot_dimension_numbers<[1], [0], [0], [1], [0, 0, 1, 1], [], []>} : vector<16x128xbf16>, vector<128x512xbf16>, vector<16x512xf32> -> vector<16x512xf32>
    %14 = arith.addf %0, %13 : vector<16x512xf32>
    %c1 = arith.constant 1 : index
    %c0_12 = arith.constant 0 : index
    %c0_13 = arith.constant 0 : index
    %15 = vector.load %arg1[%c1, %c0_12, %c0_13] : memref<4x16x576xbf16, #tpu.memory_space<vmem>>, vector<1x16x576xbf16>
    %16 = vector.shape_cast %15 : vector<1x16x576xbf16> to vector<16x576xbf16>
    %c0_14 = arith.constant 0 : index
    %c0_15 = arith.constant 0 : index
    %17 = vector.load %arg2[%c0_14, %c0_15] : memref<576x128xbf16, #tpu.memory_space<vmem>>, vector<576x128xbf16>
    %cst_16 = arith.constant dense<0.000000e+00> : vector<16x128xf32>
    %18 = tpu.matmul %16, %17, %cst_16 {dimension_numbers = #tpu.dot_dimension_numbers<[1], [0], [0], [1], [0, 0, 1, 1], [], []>} : vector<16x576xbf16>, vector<576x128xbf16>, vector<16x128xf32> -> vector<16x128xf32>
    %c0_17 = arith.constant 0 : index
    %c0_18 = arith.constant 0 : index
    %19 = vector.load %arg3[%c0_17, %c0_18] : memref<1x128xf32, #tpu.memory_space<vmem>>, vector<1x128xf32>
    %20 = vector.broadcast %19 : vector<1x128xf32> to vector<16x128xf32>
    %21 = arith.addf %18, %20 : vector<16x128xf32>
    %cst_19 = arith.constant 0.000000e+00 : f32
    %22 = vector.broadcast %cst_19 : f32 to vector<16x128xf32>
    %23 = arith.maximumf %21, %22 : vector<16x128xf32>
    %24 = arith.truncf %23 : vector<16x128xf32> to vector<16x128xbf16>
    %c1_20 = arith.constant 1 : index
    %c0_21 = arith.constant 0 : index
    %c0_22 = arith.constant 0 : index
    %25 = vector.load %arg4[%c1_20, %c0_21, %c0_22] : memref<4x128x512xbf16, #tpu.memory_space<vmem>>, vector<1x128x512xbf16>
    %26 = vector.shape_cast %25 : vector<1x128x512xbf16> to vector<128x512xbf16>
    %cst_23 = arith.constant dense<0.000000e+00> : vector<16x512xf32>
    %27 = tpu.matmul %24, %26, %cst_23 {dimension_numbers = #tpu.dot_dimension_numbers<[1], [0], [0], [1], [0, 0, 1, 1], [], []>} : vector<16x128xbf16>, vector<128x512xbf16>, vector<16x512xf32> -> vector<16x512xf32>
    %28 = arith.addf %14, %27 : vector<16x512xf32>
    %c2 = arith.constant 2 : index
    %c0_24 = arith.constant 0 : index
    %c0_25 = arith.constant 0 : index
    %29 = vector.load %arg1[%c2, %c0_24, %c0_25] : memref<4x16x576xbf16, #tpu.memory_space<vmem>>, vector<1x16x576xbf16>
    %30 = vector.shape_cast %29 : vector<1x16x576xbf16> to vector<16x576xbf16>
    %c0_26 = arith.constant 0 : index
    %c0_27 = arith.constant 0 : index
    %31 = vector.load %arg2[%c0_26, %c0_27] : memref<576x128xbf16, #tpu.memory_space<vmem>>, vector<576x128xbf16>
    %cst_28 = arith.constant dense<0.000000e+00> : vector<16x128xf32>
    %32 = tpu.matmul %30, %31, %cst_28 {dimension_numbers = #tpu.dot_dimension_numbers<[1], [0], [0], [1], [0, 0, 1, 1], [], []>} : vector<16x576xbf16>, vector<576x128xbf16>, vector<16x128xf32> -> vector<16x128xf32>
    %c0_29 = arith.constant 0 : index
    %c0_30 = arith.constant 0 : index
    %33 = vector.load %arg3[%c0_29, %c0_30] : memref<1x128xf32, #tpu.memory_space<vmem>>, vector<1x128xf32>
    %34 = vector.broadcast %33 : vector<1x128xf32> to vector<16x128xf32>
    %35 = arith.addf %32, %34 : vector<16x128xf32>
    %cst_31 = arith.constant 0.000000e+00 : f32
    %36 = vector.broadcast %cst_31 : f32 to vector<16x128xf32>
    %37 = arith.maximumf %35, %36 : vector<16x128xf32>
    %38 = arith.truncf %37 : vector<16x128xf32> to vector<16x128xbf16>
    %c2_32 = arith.constant 2 : index
    %c0_33 = arith.constant 0 : index
    %c0_34 = arith.constant 0 : index
    %39 = vector.load %arg4[%c2_32, %c0_33, %c0_34] : memref<4x128x512xbf16, #tpu.memory_space<vmem>>, vector<1x128x512xbf16>
    %40 = vector.shape_cast %39 : vector<1x128x512xbf16> to vector<128x512xbf16>
    %cst_35 = arith.constant dense<0.000000e+00> : vector<16x512xf32>
    %41 = tpu.matmul %38, %40, %cst_35 {dimension_numbers = #tpu.dot_dimension_numbers<[1], [0], [0], [1], [0, 0, 1, 1], [], []>} : vector<16x128xbf16>, vector<128x512xbf16>, vector<16x512xf32> -> vector<16x512xf32>
    %42 = arith.addf %28, %41 : vector<16x512xf32>
    %c3 = arith.constant 3 : index
    %c0_36 = arith.constant 0 : index
    %c0_37 = arith.constant 0 : index
    %43 = vector.load %arg1[%c3, %c0_36, %c0_37] : memref<4x16x576xbf16, #tpu.memory_space<vmem>>, vector<1x16x576xbf16>
    %44 = vector.shape_cast %43 : vector<1x16x576xbf16> to vector<16x576xbf16>
    %c0_38 = arith.constant 0 : index
    %c0_39 = arith.constant 0 : index
    %45 = vector.load %arg2[%c0_38, %c0_39] : memref<576x128xbf16, #tpu.memory_space<vmem>>, vector<576x128xbf16>
    %cst_40 = arith.constant dense<0.000000e+00> : vector<16x128xf32>
    %46 = tpu.matmul %44, %45, %cst_40 {dimension_numbers = #tpu.dot_dimension_numbers<[1], [0], [0], [1], [0, 0, 1, 1], [], []>} : vector<16x576xbf16>, vector<576x128xbf16>, vector<16x128xf32> -> vector<16x128xf32>
    %c0_41 = arith.constant 0 : index
    %c0_42 = arith.constant 0 : index
    %47 = vector.load %arg3[%c0_41, %c0_42] : memref<1x128xf32, #tpu.memory_space<vmem>>, vector<1x128xf32>
    %48 = vector.broadcast %47 : vector<1x128xf32> to vector<16x128xf32>
    %49 = arith.addf %46, %48 : vector<16x128xf32>
    %cst_43 = arith.constant 0.000000e+00 : f32
    %50 = vector.broadcast %cst_43 : f32 to vector<16x128xf32>
    %51 = arith.maximumf %49, %50 : vector<16x128xf32>
    %52 = arith.truncf %51 : vector<16x128xf32> to vector<16x128xbf16>
    %c3_44 = arith.constant 3 : index
    %c0_45 = arith.constant 0 : index
    %c0_46 = arith.constant 0 : index
    %53 = vector.load %arg4[%c3_44, %c0_45, %c0_46] : memref<4x128x512xbf16, #tpu.memory_space<vmem>>, vector<1x128x512xbf16>
    %54 = vector.shape_cast %53 : vector<1x128x512xbf16> to vector<128x512xbf16>
    %cst_47 = arith.constant dense<0.000000e+00> : vector<16x512xf32>
    %55 = tpu.matmul %52, %54, %cst_47 {dimension_numbers = #tpu.dot_dimension_numbers<[1], [0], [0], [1], [0, 0, 1, 1], [], []>} : vector<16x128xbf16>, vector<128x512xbf16>, vector<16x512xf32> -> vector<16x512xf32>
    %56 = arith.addf %42, %55 : vector<16x512xf32>
    %c0_48 = arith.constant 0 : index
    %c0_49 = arith.constant 0 : index
    %57 = vector.load %arg5[%c0_48, %c0_49] : memref<1x512xf32, #tpu.memory_space<vmem>>, vector<1x512xf32>
    %58 = vector.broadcast %57 : vector<1x512xf32> to vector<16x512xf32>
    %59 = arith.addf %56, %58 : vector<16x512xf32>
    %cst_50 = arith.constant 0.000000e+00 : f32
    %60 = vector.broadcast %cst_50 : f32 to vector<16x512xf32>
    %61 = arith.maximumf %59, %60 : vector<16x512xf32>
    %62 = arith.truncf %61 : vector<16x512xf32> to vector<16x512xbf16>
    %c0_51 = arith.constant 0 : index
    %c0_52 = arith.constant 0 : index
    %63 = vector.load %arg6[%c0_51, %c0_52] : memref<512x128xbf16, #tpu.memory_space<vmem>>, vector<512x128xbf16>
    %cst_53 = arith.constant dense<0.000000e+00> : vector<16x128xf32>
    %64 = tpu.matmul %62, %63, %cst_53 {dimension_numbers = #tpu.dot_dimension_numbers<[1], [0], [0], [1], [0, 0, 1, 1], [], []>} : vector<16x512xbf16>, vector<512x128xbf16>, vector<16x128xf32> -> vector<16x128xf32>
    %c0_54 = arith.constant 0 : index
    %c0_55 = arith.constant 0 : index
    %65 = vector.load %arg7[%c0_54, %c0_55] : memref<1x128xf32, #tpu.memory_space<vmem>>, vector<1x128xf32>
    %66 = vector.broadcast %65 : vector<1x128xf32> to vector<16x128xf32>
    %67 = arith.addf %64, %66 : vector<16x128xf32>
    %cst_56 = arith.constant 0.000000e+00 : f32
    %68 = vector.broadcast %cst_56 : f32 to vector<16x128xf32>
    %69 = arith.maximumf %67, %68 : vector<16x128xf32>
    %70 = arith.truncf %69 : vector<16x128xf32> to vector<16x128xbf16>
    %c0_57 = arith.constant 0 : index
    %c0_58 = arith.constant 0 : index
    %71 = vector.load %arg8[%c0_57, %c0_58] : memref<128x128xbf16, #tpu.memory_space<vmem>>, vector<128x128xbf16>
    %cst_59 = arith.constant dense<0.000000e+00> : vector<16x128xf32>
    %72 = tpu.matmul %70, %71, %cst_59 {dimension_numbers = #tpu.dot_dimension_numbers<[1], [0], [0], [1], [0, 0, 1, 1], [], []>} : vector<16x128xbf16>, vector<128x128xbf16>, vector<16x128xf32> -> vector<16x128xf32>
    %c0_60 = arith.constant 0 : index
    %c0_61 = arith.constant 0 : index
    %73 = vector.load %arg9[%c0_60, %c0_61] : memref<1x128xf32, #tpu.memory_space<vmem>>, vector<1x128xf32>
    %74 = vector.broadcast %73 : vector<1x128xf32> to vector<16x128xf32>
    %75 = arith.addf %72, %74 : vector<16x128xf32>
    %76 = tpu.iota {dimensions = array<i32: 1>} : vector<16x128xi32>
    %c9_i32 = arith.constant 9 : i32
    %77 = vector.broadcast %c9_i32 : i32 to vector<16x128xi32>
    %78 = arith.cmpi slt, %76, %77 : vector<16x128xi32>
    %cst_62 = arith.constant 0.000000e+00 : f32
    %79 = vector.broadcast %cst_62 : f32 to vector<16x128xf32>
    %80 = arith.select %78, %75, %79 : vector<16x128xi1>, vector<16x128xf32>
    %cst_63 = arith.constant dense<0.000000e+00> : vector<16xf32>
    %81 = vector.multi_reduction <add>, %80, %cst_63 [1] : vector<16x128xf32> to vector<16xf32>
    %82 = vector.shape_cast %81 : vector<16xf32> to vector<16x1xf32>
    %c9_i32_64 = arith.constant 9 : i32
    %83 = vector.broadcast %c9_i32_64 : i32 to vector<16x128xi32>
    %84 = arith.cmpi eq, %76, %83 : vector<16x128xi32>
    %cst_65 = arith.constant 0.000000e+00 : f32
    %85 = vector.broadcast %cst_65 : f32 to vector<16x128xf32>
    %86 = arith.select %84, %75, %85 : vector<16x128xi1>, vector<16x128xf32>
    %cst_66 = arith.constant dense<0.000000e+00> : vector<16xf32>
    %87 = vector.multi_reduction <add>, %86, %cst_66 [1] : vector<16x128xf32> to vector<16xf32>
    %88 = vector.shape_cast %87 : vector<16xf32> to vector<16x1xf32>
    %89 = vector.broadcast %88 : vector<16x1xf32> to vector<16x128xf32>
    %90 = arith.addf %89, %75 : vector<16x128xf32>
    %cst_67 = arith.constant 0.111111112 : f32
    %91 = vector.broadcast %cst_67 : f32 to vector<16x1xf32>
    %92 = arith.mulf %82, %91 : vector<16x1xf32>
    %93 = vector.broadcast %92 : vector<16x1xf32> to vector<16x128xf32>
    %94 = arith.subf %90, %93 : vector<16x128xf32>
    %c0_68 = arith.constant 0 : index
    %c0_69 = arith.constant 0 : index
    %95 = vector.load %arg10[%c0_68, %c0_69] : memref<16x128xf32, #tpu.memory_space<vmem>>, vector<16x128xf32>
    tpu.vector_store %arg10[%c0_68, %c0_69], %94 {strides = array<i32>} : memref<16x128xf32, #tpu.memory_space<vmem>>, vector<16x128xf32>,
    return
  }
  func.func @transform_0(%arg0: i32) -> (i32, i32, i32) {
    %c0_i32 = arith.constant 0 : i32
    %c0_i32_0 = arith.constant 0 : i32
    %c0_i32_1 = arith.constant 0 : i32
    return %c0_i32, %arg0, %c0_i32_0 : i32, i32, i32
  }
  func.func @transform_1(%arg0: i32) -> (i32, i32) {
    %c0_i32 = arith.constant 0 : i32
    %c0_i32_0 = arith.constant 0 : i32
    %c0_i32_1 = arith.constant 0 : i32
    return %c0_i32, %c0_i32_0 : i32, i32
  }
  func.func @transform_2(%arg0: i32) -> (i32, i32) {
    %c0_i32 = arith.constant 0 : i32
    %c0_i32_0 = arith.constant 0 : i32
    %c0_i32_1 = arith.constant 0 : i32
    return %c0_i32, %c0_i32_0 : i32, i32
  }
  func.func @transform_3(%arg0: i32) -> (i32, i32, i32) {
    %c0_i32 = arith.constant 0 : i32
    %c0_i32_0 = arith.constant 0 : i32
    %c0_i32_1 = arith.constant 0 : i32
    %c0_i32_2 = arith.constant 0 : i32
    return %c0_i32, %c0_i32_0, %c0_i32_1 : i32, i32, i32
  }
  func.func @transform_4(%arg0: i32) -> (i32, i32) {
    %c0_i32 = arith.constant 0 : i32
    %c0_i32_0 = arith.constant 0 : i32
    %c0_i32_1 = arith.constant 0 : i32
    return %c0_i32, %c0_i32_0 : i32, i32
  }
  func.func @transform_5(%arg0: i32) -> (i32, i32) {
    %c0_i32 = arith.constant 0 : i32
    %c0_i32_0 = arith.constant 0 : i32
    %c0_i32_1 = arith.constant 0 : i32
    return %c0_i32, %c0_i32_0 : i32, i32
  }
  func.func @transform_6(%arg0: i32) -> (i32, i32) {
    %c0_i32 = arith.constant 0 : i32
    %c0_i32_0 = arith.constant 0 : i32
    %c0_i32_1 = arith.constant 0 : i32
    return %c0_i32, %c0_i32_0 : i32, i32
  }
  func.func @transform_7(%arg0: i32) -> (i32, i32) {
    %c0_i32 = arith.constant 0 : i32
    %c0_i32_0 = arith.constant 0 : i32
    %c0_i32_1 = arith.constant 0 : i32
    return %c0_i32, %c0_i32_0 : i32, i32
  }
  func.func @transform_8(%arg0: i32) -> (i32, i32) {
    %c0_i32 = arith.constant 0 : i32
    %c0_i32_0 = arith.constant 0 : i32
    %c0_i32_1 = arith.constant 0 : i32
    return %c0_i32, %c0_i32_0 : i32, i32
  }
  func.func @transform_9(%arg0: i32) -> (i32, i32) {
    %c0_i32 = arith.constant 0 : i32
    %c0_i32_0 = arith.constant 0 : i32
    return %arg0, %c0_i32 : i32, i32
  }
}

</mosaic_0001>

<bundles_post_ra>
// kernel: dueling_dqn_forward.3
= control target key start
LH: loop header
LB: loop body
LE: loop exit
PB: predicated region body
PF: predicated region fallthrough
CT: control target
= control target key end

     0   :  { %s794_s12 = smov 0   ;;  %s896_s0 = inlined_call_operand.vmem [shape: bf16[224,160], index: 0, kind: input, shape index: {}]   ;;  %s897_s1 = inlined_call_operand.vmem [shape: bf16[160,128], index: 1, kind: input, shape index: {}]   ;;  %s898_s2 = inlined_call_operand.vmem [shape: f32[1,128], index: 2, kind: input, shape index: {}]   ;;  %s899_s3 = inlined_call_operand.vmem [shape: bf16[224,128], index: 3, kind: output, shape index: {}]  }
   0x1 LB: > { %s593_s13 = sadd.s32 4294967295, %s771_s12   ;;  %p597_p0 = scmp.ge.s32.totalorder %s771_s12, 1  ;;  %s771_s12 = sphi %s794_s12, %s13_s12  }
   0x2   : > { %p139_p1 = scmp.lt.s32.totalorder %s771_s12, 3 }
   0x4   : > { %p140_p2 = pnand %p597_p0, %p139_p1 }
   0x5   : > { %s164_s16 = smul.u32 (!%p140_p2), 14, %s593_s13 }
   0x6   : > { %143 = sbr.rel (%p140_p2) target bundleno = 280 (0x118), region = 32 }
   0x7   : > { %p165_p3 = scmp.lt.s32.totalorder (!%p140_p2), %s164_s16, 27 }
   0xb   : > { %v734_v0 = vld [vmem:[%s897_s1 + $0x38] sm:$0xff]   ;;  %v773_v1 = vmov 0   ;;  %v735_v2 = vld [vmem:[%s897_s1 + $0x30] sm:$0xff]   ;;  %s901_s16 = smov (!%p165_p3, %s164_s16), 27  ;;  %v736_v3 = vld [vmem:[%s897_s1 + $0x28] sm:$0xff]   ;;  %vm342_vm0 = vcmask 261120  }
   0xc   : > { %364 = vmatprep.subr.bf16.mxu0 %v773_v1  ;;  %705 = vmatprep.subr.bf16.mxu1 %v773_v1  ;;  %s649_s21 = sshll.u32 %s901_s16, 3  ;;  %v737_v4 = vld [vmem:[%s897_s1 + $0x20] sm:$0xff]   ;;  %v738_v7 = vld [vmem:[%s897_s1 + $0x18] sm:$0xff]   ;;  %v739_v8 = vld [vmem:[%s897_s1 + $0x10] sm:$0xff]   ;;  %s600_s15 = sshll.u32 %s901_s16, 2 }
   0xd   : > { %365 = vmatpush1.bf16.msra.mxu0 %v734_v0  ;;  %715 = vmatpush1.bf16.msra.mxu1 %v734_v0  ;;  %s817_s24 = scalar_lea.vmem %s896_s0, %s649_s21  ;;  %v740_v9 = vld [vmem:[%s897_s1 + $0x8] sm:$0xff]   ;;  %v741_v10 = vld [vmem:[%s897_s1] sm:$0xff]   ;;  %s874_s19 = scalar_lea.vmem %s899_s3, %s600_s15 }
   0xe   : > { %366 = vmatprep.subr.bf16.mxu0 %v773_v1  ;;  %706 = vmatprep.subr.bf16.mxu1 %v773_v1  ;;  %v746_v5 = vld [vmem:[%s817_s24 + $0x4] ss:$8 sps:$4 sm:$0xff]   ;;  %v744_v13 = vld [vmem:[%s817_s24] ss:$8 sps:$4 sm:$0xff]   ;;  %v750_v15 = vld [vmem:[%s817_s24 + $0x14] ss:$8 sps:$4 sm:$0xff]  }
   0xf   : > { %v749_v6 = vld [vmem:[%s817_s24 + $0x44] ss:$8 sps:$4 sm:$0xff]   ;;  %626 = vmatprep.mubr.msk.bf16.mxu0 %vm342_vm0, %v746_v5  ;;  %v747_v14 = vld [vmem:[%s817_s24 + $0x40] ss:$8 sps:$4 sm:$0xff]   ;;  %v753_v16 = vld [vmem:[%s817_s24 + $0x54] ss:$8 sps:$4 sm:$0xff]  }
  0x10   : > { %630 = vmatprep.mubr.msk.bf16.mxu1 %vm342_vm0, %v749_v6  ;;  %v742_v11 = vld [vmem:[%s897_s1 + $0x48] sm:$0xff]   ;;  %v743_v12 = vld [vmem:[%s897_s1 + $0x40] sm:$0xff]   ;;  %v752_v17 = vld [vmem:[%s817_s24 + $0x10] ss:$8 sps:$4 sm:$0xff]  }
  0x11   : > { %367 = vmatpush1.bf16.msra.mxu0 %v735_v2  ;;  %716 = vmatpush1.bf16.msra.mxu1 %v735_v2  ;;  %v755_v18 = vld [vmem:[%s817_s24 + $0x50] ss:$8 sps:$4 sm:$0xff]   ;;  %v756_v19 = vld [vmem:[%s817_s24 + $0x24] ss:$8 sps:$4 sm:$0xff]   ;;  %v758_v21 = vld [vmem:[%s817_s24 + $0x20] ss:$8 sps:$4 sm:$0xff]  }
  0x12   : > { %368 = vmatprep.subr.bf16.mxu0 %v773_v1  ;;  %707 = vmatprep.subr.bf16.mxu1 %v773_v1  ;;  %v759_v20 = vld [vmem:[%s817_s24 + $0x64] ss:$8 sps:$4 sm:$0xff]   ;;  %v761_v22 = vld [vmem:[%s817_s24 + $0x60] ss:$8 sps:$4 sm:$0xff]   ;;  %v762_v23 = vld [vmem:[%s817_s24 + $0x34] ss:$8 sps:$4 sm:$0xff]  }
  0x13   : > { %v764_v24 = vld [vmem:[%s817_s24 + $0x30] ss:$8 sps:$4 sm:$0xff]   ;;  %v864_v25 = vld [vmem:[%s898_s2] ss:$0 sm:$0xff] }
  0x15   : > { %369 = vmatpush1.bf16.msra.mxu0 %v736_v3  ;;  %717 = vmatpush1.bf16.msra.mxu1 %v736_v3 }
  0x16   : > { %370 = vmatprep.subr.bf16.mxu0 %v773_v1  ;;  %708 = vmatprep.subr.bf16.mxu1 %v773_v1 }
  0x19   : > { %371 = vmatpush1.bf16.msra.mxu0 %v737_v4  ;;  %718 = vmatpush1.bf16.msra.mxu1 %v737_v4 }
  0x1a   : > { %372 = vmatprep.subr.bf16.mxu0 %v773_v1  ;;  %709 = vmatprep.subr.bf16.mxu1 %v773_v1 }
  0x1d   : > { %373 = vmatpush1.bf16.msra.mxu0 %v738_v7  ;;  %719 = vmatpush1.bf16.msra.mxu1 %v738_v7 }
  0x1e   : > { %374 = vmatprep.subr.bf16.mxu0 %v773_v1  ;;  %710 = vmatprep.subr.bf16.mxu1 %v773_v1 }
  0x21   : > { %375 = vmatpush1.bf16.msra.mxu0 %v739_v8  ;;  %720 = vmatpush1.bf16.msra.mxu1 %v739_v8 }
  0x22   : > { %376 = vmatprep.subr.bf16.mxu0 %v773_v1  ;;  %711 = vmatprep.subr.bf16.mxu1 %v773_v1 }
  0x25   : > { %377 = vmatpush1.bf16.msra.mxu0 %v740_v9  ;;  %721 = vmatpush1.bf16.msra.mxu1 %v740_v9 }
  0x26   : > { %378 = vmatprep.subr.bf16.mxu0 %v773_v1  ;;  %712 = vmatprep.subr.bf16.mxu1 %v773_v1 }
  0x29   : > { %379 = vmatpush1.bf16.msra.mxu0 %v741_v10  ;;  %722 = vmatpush1.bf16.msra.mxu1 %v741_v10 }
  0x2a   : > { %392 = vmatprep.subr.bf16.mxu0 %v773_v1  ;;  %713 = vmatprep.subr.bf16.mxu1 %v773_v1 }
  0x2d   : > { %393 = vmatpush2.bf16.msra.mxu0 %v742_v11  ;;  %723 = vmatpush2.bf16.msra.mxu1 %v742_v11 }
  0x2e   : > { %394 = vmatprep.subr.bf16.mxu0 %v773_v1  ;;  %714 = vmatprep.subr.bf16.mxu1 %v773_v1 }
  0x31   : > { %395 = vmatpush2.bf16.msra.mxu0 %v743_v12  ;;  %724 = vmatpush2.bf16.msra.mxu1 %v743_v12 }
  0x34   : > { %397 = vmatmul.mubr.bf16.vlgmr.msra.gmra.mxu0 %v744_v13  ;;  %429 = vmatmul.mubr.bf16.vlgmr.msra.gmra.mxu1 %v747_v14 }
  0x35   : > { %627 = vmatprep.mubr.msk.bf16.mxu0 %vm342_vm0, %v750_v15  ;;  %631 = vmatprep.mubr.msk.bf16.mxu1 %vm342_vm0, %v753_v16 }
  0x3c   : > { %405 = vmatmul.mubr.bf16.gmra.mxu0 %v752_v17  ;;  %437 = vmatmul.mubr.bf16.gmra.mxu1 %v755_v18 }
  0x3d   : > { %628 = vmatprep.mubr.msk.bf16.mxu0 %vm342_vm0, %v756_v19  ;;  %632 = vmatprep.mubr.msk.bf16.mxu1 %vm342_vm0, %v759_v20 }
  0x44   : > { %413 = vmatmul.mubr.bf16.gmra.mxu0 %v758_v21  ;;  %445 = vmatmul.mubr.bf16.gmra.mxu1 %v761_v22 }
  0x45   : > { %629 = vmatprep.mubr.msk.bf16.mxu0 %vm342_vm0, %v762_v23 }
  0x4c   : > { %421 = vmatmul.mubr.bf16.gmra.mxu0 %v764_v24 }
  0xf4   : > { %v398_v26 = vpop.f32.mrf.mxu0  ;;  %v430_v27 = vpop.f32.mrf.mxu1 }
  0xf5   : > { %v431_v28 = vadd.f32 %v864_v25, %v430_v27  ;;  %v399_v31 = vadd.f32 %v864_v25, %v398_v26 }
  0xf6   : > { %v400_v29 = vpop.f32.mrf.mxu0  ;;  %v432_v30 = vpop.f32.mrf.mxu1 }
  0xf7   : > { %v461_v34 = vmax.f32 %v431_v28, 0.0  ;;  %v453_v39 = vmax.f32 %v399_v31, 0.0 }
  0xf8   : > { %v401_v32 = vpop.f32.mrf.mxu0  ;;  %v433_v33 = vpop.f32.mrf.mxu1 }
  0xf9   : > { %v402_v35 = vadd.f32 %v864_v25, %v401_v32  ;;  %v434_v36 = vadd.f32 %v864_v25, %v433_v33 }
  0xfa   : > { %v403_v37 = vpop.f32.mrf.mxu0  ;;  %v435_v38 = vpop.f32.mrf.mxu1 }
  0xfb   : > { %v454_v40 = vmax.f32 %v402_v35, 0.0  ;;  %v462_v41 = vmax.f32 %v434_v36, 0.0 }
  0xfc   : > { %v406_v42 = vpop.f32.mrf.mxu0  ;;  %v438_v43 = vpop.f32.mrf.mxu1 }
  0xfd   : > { %v667_v44 = vpack.c.bf16 %v454_v40, %v453_v39  ;;  %v687_v45 = vpack.c.bf16 %v462_v41, %v461_v34  ;;  %v439_v46 = vadd.f32 %v864_v25, %v438_v43  ;;  %v407_v49 = vadd.f32 %v864_v25, %v406_v42 }
  0xfe   : > { %v408_v47 = vpop.f32.mrf.mxu0  ;;  %v440_v48 = vpop.f32.mrf.mxu1 }
  0xff   : > { %668 = vst [vmem:[%s874_s19] sm:$0xff] %v667_v44   ;;  %702 = vst [vmem:[%s874_s19 + $0x20] sm:$0xff] %v687_v45   ;;  %v463_v52 = vmax.f32 %v439_v46, 0.0  ;;  %v455_v57 = vmax.f32 %v407_v49, 0.0 }
 0x100   : > { %v409_v50 = vpop.f32.mrf.mxu0  ;;  %v441_v51 = vpop.f32.mrf.mxu1 }
 0x101   : > { %v410_v53 = vadd.f32 %v864_v25, %v409_v50  ;;  %v442_v54 = vadd.f32 %v864_v25, %v441_v51 }
 0x102   : > { %v411_v55 = vpop.f32.mrf.mxu0  ;;  %v443_v56 = vpop.f32.mrf.mxu1 }
 0x103   : > { %v456_v58 = vmax.f32 %v410_v53, 0.0  ;;  %v464_v59 = vmax.f32 %v442_v54, 0.0 }
 0x104   : > { %v414_v60 = vpop.f32.mrf.mxu0  ;;  %v446_v61 = vpop.f32.mrf.mxu1 }
 0x105   : > { %v672_v62 = vpack.c.bf16 %v456_v58, %v455_v57  ;;  %v692_v63 = vpack.c.bf16 %v464_v59, %v463_v52  ;;  %v447_v0 = vadd.f32 %v864_v25, %v446_v61  ;;  %v415_v3 = vadd.f32 %v864_v25, %v414_v60 }
 0x106   : > { %v416_v1 = vpop.f32.mrf.mxu0  ;;  %v448_v2 = vpop.f32.mrf.mxu1 }
 0x107   : > { %699 = vst [vmem:[%s874_s19 + $0x8] sm:$0xff] %v672_v62   ;;  %703 = vst [vmem:[%s874_s19 + $0x28] sm:$0xff] %v692_v63   ;;  %v465_v6 = vmax.f32 %v447_v0, 0.0  ;;  %v457_v11 = vmax.f32 %v415_v3, 0.0 }
 0x108   : > { %v417_v4 = vpop.f32.mrf.mxu0  ;;  %v449_v5 = vpop.f32.mrf.mxu1 }
 0x109   : > { %v418_v7 = vadd.f32 %v864_v25, %v417_v4  ;;  %v450_v8 = vadd.f32 %v864_v25, %v449_v5 }
 0x10a   : > { %v419_v9 = vpop.f32.mrf.mxu0  ;;  %v451_v10 = vpop.f32.mrf.mxu1 }
 0x10b   : > { %v458_v12 = vmax.f32 %v418_v7, 0.0  ;;  %v466_v13 = vmax.f32 %v450_v8, 0.0 }
 0x10c   : > { %v422_v14 = vpop.f32.mrf.mxu0 }
 0x10d   : > { %v677_v15 = vpack.c.bf16 %v458_v12, %v457_v11  ;;  %v697_v16 = vpack.c.bf16 %v466_v13, %v465_v6  ;;  %v423_v18 = vadd.f32 %v864_v25, %v422_v14 }
 0x10e   : > { %v424_v17 = vpop.f32.mrf.mxu0 }
 0x10f   : > { %700 = vst [vmem:[%s874_s19 + $0x10] sm:$0xff] %v677_v15   ;;  %704 = vst [vmem:[%s874_s19 + $0x30] sm:$0xff] %v697_v16   ;;  %v459_v22 = vmax.f32 %v423_v18, 0.0 }
 0x110   : > { %v425_v19 = vpop.f32.mrf.mxu0 }
 0x111   : > { %v426_v20 = vadd.f32 %v864_v25, %v425_v19 }
 0x112   : > { %v427_v21 = vpop.f32.mrf.mxu0 }
 0x113   : > { %v460_v23 = vmax.f32 %v426_v20, 0.0 }
 0x115   : > { %v682_v24 = vpack.c.bf16 %v460_v23, %v459_v22 }
 0x117   : > { %701 = vst [vmem:[%s874_s19 + $0x18] sm:$0xff] %v682_v24  }
 0x118 PF: > { %s13_s12 = sadd.s32 1, %s771_s12  }
 0x119   : > { %p10_p4 = scmp.ge.s32.totalorder %s13_s12, 4  }
 0x11b   :  { %12 = sbr.rel (!%p10_p4) target bundleno = 1 (0x1), region = 62 }

// kernel: dueling_dqn_forward.4
= control target key start
LH: loop header
LB: loop body
LE: loop exit
PB: predicated region body
PF: predicated region fallthrough
CT: control target
= control target key end

     0   :  { %s641_s12 = smov 0   ;;  %s719_s0 = inlined_call_operand.vmem [shape: bf16[32,288], index: 0, kind: input, shape index: {}]   ;;  %s720_s1 = inlined_call_operand.vmem [shape: bf16[288,128], index: 1, kind: input, shape index: {}]   ;;  %s721_s2 = inlined_call_operand.vmem [shape: f32[1,128], index: 2, kind: input, shape index: {}]   ;;  %s722_s3 = inlined_call_operand.vmem [shape: bf16[32,128], index: 3, kind: output, shape index: {}]  }
   0x1 LB: > { %s502_s13 = sadd.s32 4294967295, %s617_s12   ;;  %p506_p0 = scmp.ge.s32.totalorder %s617_s12, 1  ;;  %s617_s12 = sphi %s641_s12, %s13_s12  }
   0x2   : > { %p139_p1 = scmp.lt.s32.totalorder %s617_s12, 3 }
   0x4   : > { %p140_p2 = pnand %p506_p0, %p139_p1 }
   0x5   : > { %s507_s18 = sshll.u32 (!%p140_p2), %s502_s13, 1 }
   0x6   : > { %143 = sbr.rel (%p140_p2) target bundleno = 254 (0xfe), region = 32  ;;  %p165_p3 = scmp.lt.s32.totalorder (!%p140_p2), %s507_s18, 3 }
   0xb   : > { %v589_v0 = vld [vmem:[%s720_s1 + $0x78] sm:$0xff]   ;;  %v619_v2 = vmov 0.0   ;;  %v591_v3 = vld [vmem:[%s720_s1 + $0x70] sm:$0xff]   ;;  %v593_v5 = vld [vmem:[%s720_s1 + $0x68] sm:$0xff]   ;;  %vm620_vm0 = vmmov 0   ;;  %s724_s18 = smov (!%p165_p3, %s507_s18), 3 }
   0xc   : > { %v590_v1 = vld [vmem:[%s720_s1 + $0x38] sm:$0xff]   ;;  %570 = vmatprep.subr.bf16.mxu1 %v619_v2  ;;  %545 = vmatprep.subr.bf16.mxu0 %v589_v0  ;;  %v592_v4 = vld [vmem:[%s720_s1 + $0x30] sm:$0xff]   ;;  %v594_v6 = vld [vmem:[%s720_s1 + $0x28] sm:$0xff]   ;;  %s578_s6 = smul.u32 12, %s724_s18  ;;  %vm348_vm1 = vcmask 261120   ;;  %s510_s5 = sshll.u32 %s724_s18, 2 }
   0xd   : > { %546 = vmatpush3.bf16.msra.mxu0 %v590_v1  ;;  %574 = vmatprep.mubr.msk.bf16.mxu1 %vm620_vm0, %v619_v2  ;;  %v595_v7 = vld [vmem:[%s720_s1 + $0x60] sm:$0xff]   ;;  %v597_v9 = vld [vmem:[%s720_s1 + $0x58] sm:$0xff]   ;;  %v603_v10 = vld [vmem:[%s720_s1 + $0x88] sm:$0xff]   ;;  %s175_s8 = scalar_lea.vmem %s722_s3, %s510_s5 }
   0xe   : > { %547 = vmatprep.subr.bf16.mxu0 %v591_v3  ;;  %v596_v8 = vld [vmem:[%s720_s1 + $0x20] sm:$0xff]   ;;  %v598_v11 = vld [vmem:[%s720_s1 + $0x18] sm:$0xff]   ;;  %v599_v12 = vld [vmem:[%s720_s1 + $0x50] sm:$0xff]   ;;  %571 = vmatpush3.bf16.msra.mxu1 %v603_v10  ;;  %s169_s16 = scalar_lea.vmem %s719_s0, %s578_s6 }
   0xf   : > { %572 = vmatprep.subr.bf16.mxu1 %v619_v2  ;;  %v606_v13 = vld [vmem:[%s720_s1 + $0x80] sm:$0xff]   ;;  %v600_v14 = vld [vmem:[%s720_s1 + $0x10] sm:$0xff]   ;;  %v601_v16 = vld [vmem:[%s720_s1 + $0x48] sm:$0xff]  }
  0x10   : > { %v609_v15 = vld [vmem:[%s169_s16 + $0x4] ss:$12 sps:$4 sm:$0xff]   ;;  %v610_v17 = vld [vmem:[%s169_s16 + $0x8] ss:$12 sps:$4 sm:$0xff]   ;;  %v607_v21 = vld [vmem:[%s169_s16] ss:$12 sps:$4 sm:$0xff]  }
  0x11   : > { %548 = vmatpush3.bf16.msra.mxu0 %v592_v4  ;;  %384 = vmatprep.mubr.bf16.mxu0 %v609_v15  ;;  %v602_v18 = vld [vmem:[%s720_s1 + $0x8] sm:$0xff]   ;;  %v604_v19 = vld [vmem:[%s720_s1 + $0x40] sm:$0xff]  }
  0x12   : > { %549 = vmatprep.subr.bf16.mxu0 %v593_v5  ;;  %573 = vmatpush3.bf16.msra.mxu1 %v606_v13  ;;  %v605_v20 = vld [vmem:[%s720_s1] sm:$0xff]  }
  0x13   : > { %v511_v27 = vld [vmem:[%s721_s2] ss:$0 sm:$0xff] }
  0x15   : > { %550 = vmatpush3.bf16.msra.mxu0 %v594_v6  ;;  %575 = vmatmul.mubr.msk.bf16.vlgmr.msra.gmra.mxu1 %vm348_vm1, %v610_v17 }
  0x16   : > { %551 = vmatprep.subr.bf16.mxu0 %v595_v7 }
  0x19   : > { %552 = vmatpush3.bf16.msra.mxu0 %v596_v8 }
  0x1a   : > { %553 = vmatprep.subr.bf16.mxu0 %v597_v9 }
  0x1d   : > { %554 = vmatpush3.bf16.msra.mxu0 %v598_v11 }
  0x1e   : > { %555 = vmatprep.subr.bf16.mxu0 %v599_v12 }
  0x21   : > { %556 = vmatpush3.bf16.msra.mxu0 %v600_v14 }
  0x22   : > { %557 = vmatprep.subr.bf16.mxu0 %v601_v16 }
  0x25   : > { %558 = vmatpush3.bf16.msra.mxu0 %v602_v18 }
  0x26   : > { %559 = vmatprep.subr.bf16.mxu0 %v604_v19 }
  0x29   : > { %560 = vmatpush3.bf16.msra.mxu0 %v605_v20 }
  0x2c   : > { %385 = vmatmul.mubr.bf16.vlgmr.msra.gmra.mxu0 %v607_v21 }
  0xd5   : > { %v427_v22 = vpop.f32.mrf.mxu1 }
  0xd7   : > { %v576_v23 = vpop.f32.mrf.mxu1 }
  0xd9   : > { %v430_v24 = vpop.f32.mrf.mxu1 }
  0xdb   : > { %v577_v25 = vpop.f32.mrf.mxu1 }
  0xec   : > { %v561_v26 = vpop.f32.mrf.mxu0 }
  0xee   : > { %v562_v28 = vpop.f32.mrf.mxu0 }
  0xef   : > { %v563_v29 = vadd.f32 %v562_v28, %v561_v26 }
  0xf0   : > { %v564_v30 = vpop.f32.mrf.mxu0 }
  0xf1   : > { %v387_v31 = vadd.f32 %v563_v29, %v511_v27 }
  0xf2   : > { %v565_v32 = vpop.f32.mrf.mxu0 }
  0xf3   : > { %v566_v33 = vadd.f32 %v565_v32, %v564_v30  ;;  %v428_v34 = vadd.f32 %v427_v22, %v387_v31 }
  0xf5   : > { %v390_v35 = vadd.f32 %v566_v33, %v511_v27  ;;  %v434_v37 = vmax.f32 %v428_v34, 0.0 }
  0xf7   : > { %v431_v36 = vadd.f32 %v430_v24, %v390_v35 }
  0xf9   : > { %v435_v38 = vmax.f32 %v431_v36, 0.0 }
  0xfb   : > { %v543_v39 = vpack.c.bf16 %v435_v38, %v434_v37 }
  0xfd   : > { %544 = vst [vmem:[%s175_s8] sm:$0xff] %v543_v39  }
  0xfe PF: > { %s13_s12 = sadd.s32 1, %s617_s12  }
  0xff   : > { %p10_p4 = scmp.ge.s32.totalorder %s13_s12, 4  }
 0x101   :  { %12 = sbr.rel (!%p10_p4) target bundleno = 1 (0x1), region = 62 }

// kernel: dueling_dqn_forward.5
= control target key start
LH: loop header
LB: loop body
LE: loop exit
PB: predicated region body
PF: predicated region fallthrough
CT: control target
= control target key end

     0   :  { %v3630_v36 = vmov 0.0   ;;  %vm3631_vm0 = vmmov 0   ;;  %vm359_vm1 = vcmask 523264   ;;  %s4819_s1 = inlined_call_operand.vmem [shape: bf16[576,128], index: 1, kind: input, shape index: {}]   ;;  %s4820_s0 = inlined_call_operand.vmem [shape: bf16[4,16,576], index: 0, kind: input, shape index: {}]   ;;  %s4821_s3 = inlined_call_operand.vmem [shape: bf16[4,128,512], index: 3, kind: input, shape index: {}]   ;;  %s4822_s2 = inlined_call_operand.vmem [shape: f32[1,128], index: 2, kind: input, shape index: {}]   ;;  %s4823_s5 = inlined_call_operand.vmem [shape: bf16[512,128], index: 5, kind: input, shape index: {}]   ;;  %s4824_s7 = inlined_call_operand.vmem [shape: bf16[128,128], index: 7, kind: input, shape index: {}]   ;;  %s4825_s4 = inlined_call_operand.vmem [shape: f32[1,512], index: 4, kind: input, shape index: {}]   ;;  %s4826_s6 = inlined_call_operand.vmem [shape: f32[1,128], index: 6, kind: input, shape index: {}]   ;;  %s4827_s8 = inlined_call_operand.vmem [shape: f32[1,128], index: 8, kind: input, shape index: {}]   ;;  %s4828_s9 = inlined_call_operand.vmem [shape: f32[16,128], index: 9, kind: output, shape index: {}]  }
   0x1   :  { %v3686_v0 = vld [vmem:[%s4819_s1 + $0x78] sm:$0xff]   ;;  %v3709_v4 = vld [vmem:[%s4819_s1 + $0x70] sm:$0xff]   ;;  %v3733_v8 = vld [vmem:[%s4819_s1 + $0x68] sm:$0xff]  }
   0x2   :  { %v3691_v1 = vld [vmem:[%s4819_s1 + $0xf8] sm:$0xff]   ;;  %2978 = vmatprep.subr.bf16.mxu0 %v3686_v0  ;;  %v3715_v5 = vld [vmem:[%s4819_s1 + $0xf0] sm:$0xff]   ;;  %v3739_v9 = vld [vmem:[%s4819_s1 + $0xe8] sm:$0xff]  }
   0x3   :  { %v3697_v2 = vld [vmem:[%s4819_s1 + $0x38] sm:$0xff]   ;;  %3000 = vmatprep.subr.bf16.mxu1 %v3691_v1  ;;  %v3721_v6 = vld [vmem:[%s4819_s1 + $0x30] sm:$0xff]   ;;  %v3745_v10 = vld [vmem:[%s4819_s1 + $0x28] sm:$0xff]  }
   0x4   :  { %v3703_v3 = vld [vmem:[%s4819_s1 + $0xb8] sm:$0xff]   ;;  %2979 = vmatpush3.bf16.msra.mxu0 %v3697_v2  ;;  %v3727_v7 = vld [vmem:[%s4819_s1 + $0xb0] sm:$0xff]   ;;  %v3751_v11 = vld [vmem:[%s4819_s1 + $0xa8] sm:$0xff]  }
   0x5   :  { %3001 = vmatpush3.bf16.msra.mxu1 %v3703_v3  ;;  %2980 = vmatprep.subr.bf16.mxu0 %v3709_v4  ;;  %v3757_v12 = vld [vmem:[%s4819_s1 + $0x60] sm:$0xff]   ;;  %v3781_v16 = vld [vmem:[%s4819_s1 + $0x58] sm:$0xff]   ;;  %v3805_v20 = vld [vmem:[%s4819_s1 + $0x50] sm:$0xff]  }
   0x6   :  { %3002 = vmatprep.subr.bf16.mxu1 %v3715_v5  ;;  %v3763_v13 = vld [vmem:[%s4819_s1 + $0xe0] sm:$0xff]   ;;  %v3787_v17 = vld [vmem:[%s4819_s1 + $0xd8] sm:$0xff]   ;;  %v3811_v21 = vld [vmem:[%s4819_s1 + $0xd0] sm:$0xff]  }
   0x7   :  { %v3769_v14 = vld [vmem:[%s4819_s1 + $0x20] sm:$0xff]   ;;  %v3793_v18 = vld [vmem:[%s4819_s1 + $0x18] sm:$0xff]   ;;  %v3817_v22 = vld [vmem:[%s4819_s1 + $0x10] sm:$0xff]  }
   0x8   :  { %2981 = vmatpush3.bf16.msra.mxu0 %v3721_v6  ;;  %v3775_v15 = vld [vmem:[%s4819_s1 + $0xa0] sm:$0xff]   ;;  %v3799_v19 = vld [vmem:[%s4819_s1 + $0x98] sm:$0xff]   ;;  %v3823_v23 = vld [vmem:[%s4819_s1 + $0x90] sm:$0xff]  }
   0x9   :  { %3003 = vmatpush3.bf16.msra.mxu1 %v3727_v7  ;;  %2982 = vmatprep.subr.bf16.mxu0 %v3733_v8  ;;  %v3829_v24 = vld [vmem:[%s4819_s1 + $0x48] sm:$0xff]   ;;  %v3853_v28 = vld [vmem:[%s4819_s1 + $0x40] sm:$0xff]   ;;  %v3892_v37 = vld [vmem:[%s4819_s1 + $0x118] sm:$0xff]  }
   0xa   :  { %3004 = vmatprep.subr.bf16.mxu1 %v3739_v9  ;;  %v3835_v25 = vld [vmem:[%s4819_s1 + $0xc8] sm:$0xff]   ;;  %v3859_v29 = vld [vmem:[%s4819_s1 + $0xc0] sm:$0xff]   ;;  %v3899_v38 = vld [vmem:[%s4819_s1 + $0x110] sm:$0xff]  }
   0xb   :  { %v3841_v26 = vld [vmem:[%s4819_s1 + $0x8] sm:$0xff]   ;;  %v3865_v30 = vld [vmem:[%s4819_s1] sm:$0xff]  }
   0xc   :  { %2983 = vmatpush3.bf16.msra.mxu0 %v3745_v10  ;;  %v3847_v27 = vld [vmem:[%s4819_s1 + $0x88] sm:$0xff]   ;;  %v3871_v31 = vld [vmem:[%s4819_s1 + $0x80] sm:$0xff]  }
   0xd   :  { %3005 = vmatpush3.bf16.msra.mxu1 %v3751_v11  ;;  %2984 = vmatprep.subr.bf16.mxu0 %v3757_v12  ;;  %v3330_v32 = vld [vmem:[%s4820_s0] ss:$20 sps:$4 sm:$0xff]   ;;  %v3332_v33 = vld [vmem:[%s4820_s0 + $0x4] ss:$20 sps:$4 sm:$0xff]   ;;  %v3333_v34 = vld [vmem:[%s4820_s0 + $0x8] ss:$20 sps:$4 sm:$0xff]  }
   0xe   :  { %3006 = vmatprep.subr.bf16.mxu1 %v3763_v13  ;;  %v3335_v35 = vld [vmem:[%s4820_s0 + $0xc] ss:$20 sps:$4 sm:$0xff]   ;;  %395 = vmatprep.mubr.bf16.mxu0 %v3332_v33  ;;  %v3346_v40 = vld [vmem:[%s4820_s0 + $0x34] ss:$20 sps:$4 sm:$0xff]   ;;  %v3340_v42 = vld [vmem:[%s4820_s0 + $0x10] ss:$20 sps:$4 sm:$0xff]  }
   0xf   :  { %436 = vmatprep.mubr.bf16.mxu1 %v3335_v35  ;;  %v3908_v39 = vld [vmem:[%s4819_s1 + $0x108] sm:$0xff]   ;;  %v3920_v41 = vld [vmem:[%s4819_s1 + $0x100] sm:$0xff]   ;;  %v3632_v33 = vmov 0  }
  0x10   :  { %2985 = vmatpush3.bf16.msra.mxu0 %v3769_v14  ;;  %v3343_v43 = vld [vmem:[%s4820_s0 + $0x2c] ss:$20 sps:$4 sm:$0xff]   ;;  %v3344_v44 = vld [vmem:[%s4820_s0 + $0x30] ss:$20 sps:$4 sm:$0xff]   ;;  %v3341_v45 = vld [vmem:[%s4820_s0 + $0x28] ss:$20 sps:$4 sm:$0xff]  }
  0x11   :  { %3007 = vmatpush3.bf16.msra.mxu1 %v3775_v15  ;;  %2986 = vmatprep.subr.bf16.mxu0 %v3781_v16  ;;  %v3347_v46 = vld [vmem:[%s4820_s0 + $0x38] ss:$20 sps:$4 sm:$0xff]   ;;  %v3348_v47 = vld [vmem:[%s4821_s3 + $0x1e0] ss:$16 sps:$4 sm:$0xff]   ;;  %v3350_v48 = vld [vmem:[%s4821_s3 + $0x1e4] ss:$16 sps:$4 sm:$0xff]  }
  0x12   :  { %3008 = vmatprep.subr.bf16.mxu1 %v3787_v17  ;;  %v3351_v49 = vld [vmem:[%s4821_s3 + $0x1e8] ss:$16 sps:$4 sm:$0xff]   ;;  %v3353_v50 = vld [vmem:[%s4821_s3 + $0x1ec] ss:$16 sps:$4 sm:$0xff]   ;;  %v3354_v51 = vld [vmem:[%s4821_s3 + $0x1c0] ss:$16 sps:$4 sm:$0xff]  }
  0x13   :  { %v3356_v52 = vld [vmem:[%s4821_s3 + $0x1c4] ss:$16 sps:$4 sm:$0xff]   ;;  %v3357_v53 = vld [vmem:[%s4821_s3 + $0x1c8] ss:$16 sps:$4 sm:$0xff]   ;;  %v3359_v54 = vld [vmem:[%s4821_s3 + $0x1cc] ss:$16 sps:$4 sm:$0xff]  }
  0x14   :  { %2987 = vmatpush3.bf16.msra.mxu0 %v3793_v18  ;;  %v3362_v55 = vld [vmem:[%s4821_s3 + $0x1a4] ss:$16 sps:$4 sm:$0xff]   ;;  %v3365_v56 = vld [vmem:[%s4821_s3 + $0x1ac] ss:$16 sps:$4 sm:$0xff]   ;;  %v3360_v57 = vld [vmem:[%s4821_s3 + $0x1a0] ss:$16 sps:$4 sm:$0xff]  }
  0x15   :  { %3009 = vmatpush3.bf16.msra.mxu1 %v3799_v19  ;;  %2988 = vmatprep.subr.bf16.mxu0 %v3805_v20  ;;  %v3363_v58 = vld [vmem:[%s4821_s3 + $0x1a8] ss:$16 sps:$4 sm:$0xff]   ;;  %v3368_v59 = vld [vmem:[%s4821_s3 + $0x184] ss:$16 sps:$4 sm:$0xff]   ;;  %v3371_v60 = vld [vmem:[%s4821_s3 + $0x18c] ss:$16 sps:$4 sm:$0xff]  }
  0x16   :  { %3010 = vmatprep.subr.bf16.mxu1 %v3811_v21  ;;  %v3366_v61 = vld [vmem:[%s4821_s3 + $0x180] ss:$16 sps:$4 sm:$0xff]   ;;  %v3369_v62 = vld [vmem:[%s4821_s3 + $0x188] ss:$16 sps:$4 sm:$0xff]   ;;  %v3374_v63 = vld [vmem:[%s4821_s3 + $0x164] ss:$16 sps:$4 sm:$0xff]  }
  0x18   :  { %2989 = vmatpush3.bf16.msra.mxu0 %v3817_v22 }
  0x19   :  { %3011 = vmatpush3.bf16.msra.mxu1 %v3823_v23  ;;  %2990 = vmatprep.subr.bf16.mxu0 %v3829_v24 }
  0x1a   :  { %3012 = vmatprep.subr.bf16.mxu1 %v3835_v25 }
  0x1c   :  { %2991 = vmatpush3.bf16.msra.mxu0 %v3841_v26 }
  0x1d   :  { %3013 = vmatpush3.bf16.msra.mxu1 %v3847_v27  ;;  %2992 = vmatprep.subr.bf16.mxu0 %v3853_v28 }
  0x1e   :  { %3014 = vmatprep.subr.bf16.mxu1 %v3859_v29 }
  0x20   :  { %2993 = vmatpush3.bf16.msra.mxu0 %v3865_v30 }
  0x21   :  { %3015 = vmatpush3.bf16.msra.mxu1 %v3871_v31  ;;  %3049 = vmatprep.subr.bf16.mxu0 %v3691_v1  ;;  %v3372_v1 = vld [vmem:[%s4821_s3 + $0x160] ss:$16 sps:$4 sm:$0xff]  }
  0x22   :  { %3227 = vmatprep.subr.bf16.mxu1 %v3630_v36 }
  0x23   :  { %396 = vmatmul.mubr.bf16.vlgmr.msra.gmra.mxu0 %v3330_v32  ;;  %v3401_v32 = vld [vmem:[%s4821_s3 + $0xec] ss:$16 sps:$4 sm:$0xff]  }
  0x24   :  { %437 = vmatmul.mubr.bf16.vlgmr.msra.gmra.mxu1 %v3333_v34  ;;  %3050 = vmatpush3.bf16.msra.mxu0 %v3703_v3  ;;  %v3378_v3 = vld [vmem:[%s4821_s3 + $0x140] ss:$16 sps:$4 sm:$0xff]  }
  0x25   :  { %3228 = vmatpush3.bf16.msra.mxu1 %v3892_v37  ;;  %3235 = vmatprep.mubr.msk.bf16.mxu1 %vm3631_vm0, %v3630_v36 }
  0x26   :  { %3229 = vmatprep.subr.bf16.mxu1 %v3630_v36  ;;  %3051 = vmatprep.subr.bf16.mxu0 %v3715_v5  ;;  %v3381_v5 = vld [vmem:[%s4821_s3 + $0x148] ss:$16 sps:$4 sm:$0xff]  }
  0x27   :  { %629 = vmatprep.mubr.bf16.mxu0 %v3346_v40 }
  0x28   :  { %3052 = vmatpush3.bf16.msra.mxu0 %v3727_v7  ;;  %v3386_v7 = vld [vmem:[%s4821_s3 + $0x124] ss:$16 sps:$4 sm:$0xff]  }
  0x29   :  { %3230 = vmatpush3.bf16.msra.mxu1 %v3899_v38  ;;  %3053 = vmatprep.subr.bf16.mxu0 %v3739_v9  ;;  %v3384_v9 = vld [vmem:[%s4821_s3 + $0x120] ss:$16 sps:$4 sm:$0xff]  }
  0x2a   :  { %3231 = vmatprep.subr.bf16.mxu1 %v3630_v36 }
  0x2c   :  { %3054 = vmatpush3.bf16.msra.mxu0 %v3751_v11  ;;  %v3392_v11 = vld [vmem:[%s4821_s3 + $0x104] ss:$16 sps:$4 sm:$0xff]  }
  0x2d   :  { %3232 = vmatpush3.bf16.msra.mxu1 %v3908_v39  ;;  %3055 = vmatprep.subr.bf16.mxu0 %v3763_v13  ;;  %v3390_v13 = vld [vmem:[%s4821_s3 + $0x100] ss:$16 sps:$4 sm:$0xff]  }
  0x2e   :  { %3233 = vmatprep.subr.bf16.mxu1 %v3630_v36 }
  0x30   :  { %3056 = vmatpush3.bf16.msra.mxu0 %v3775_v15  ;;  %v3398_v15 = vld [vmem:[%s4821_s3 + $0xe4] ss:$16 sps:$4 sm:$0xff]  }
  0x31   :  { %3234 = vmatpush3.bf16.msra.mxu1 %v3920_v41  ;;  %3057 = vmatprep.subr.bf16.mxu0 %v3787_v17 }
  0x32   :  { %3027 = vmatprep.subr.bf16.mxu1 %v3686_v0  ;;  %v3377_v0 = vld [vmem:[%s4821_s3 + $0x16c] ss:$16 sps:$4 sm:$0xff]  }
  0x34   :  { %3236 = vmatmul.mubr.msk.bf16.vlgmr.msra.gmra.mxu1 %vm359_vm1, %v3340_v42  ;;  %3058 = vmatpush3.bf16.msra.mxu0 %v3799_v19 }
  0x35   :  { %3028 = vmatpush3.bf16.msra.mxu1 %v3697_v2  ;;  %3059 = vmatprep.subr.bf16.mxu0 %v3811_v21  ;;  %v3375_v2 = vld [vmem:[%s4821_s3 + $0x168] ss:$16 sps:$4 sm:$0xff]  }
  0x36   :  { %3029 = vmatprep.subr.bf16.mxu1 %v3709_v4  ;;  %588 = vmatprep.mubr.bf16.mxu1 %v3343_v43  ;;  %v3380_v4 = vld [vmem:[%s4821_s3 + $0x144] ss:$16 sps:$4 sm:$0xff]  }
  0x38   :  { %3060 = vmatpush3.bf16.msra.mxu0 %v3823_v23 }
  0x39   :  { %3030 = vmatpush3.bf16.msra.mxu1 %v3721_v6  ;;  %3061 = vmatprep.subr.bf16.mxu0 %v3835_v25  ;;  %v3383_v6 = vld [vmem:[%s4821_s3 + $0x14c] ss:$16 sps:$4 sm:$0xff]  }
  0x3a   :  { %3031 = vmatprep.subr.bf16.mxu1 %v3733_v8  ;;  %v3389_v8 = vld [vmem:[%s4821_s3 + $0x12c] ss:$16 sps:$4 sm:$0xff]  }
  0x3c   :  { %3062 = vmatpush3.bf16.msra.mxu0 %v3847_v27 }
  0x3d   :  { %3032 = vmatpush3.bf16.msra.mxu1 %v3745_v10  ;;  %3063 = vmatprep.subr.bf16.mxu0 %v3859_v29  ;;  %v3387_v10 = vld [vmem:[%s4821_s3 + $0x128] ss:$16 sps:$4 sm:$0xff]  }
  0x3e   :  { %3033 = vmatprep.subr.bf16.mxu1 %v3757_v12  ;;  %v3395_v12 = vld [vmem:[%s4821_s3 + $0x10c] ss:$16 sps:$4 sm:$0xff]  }
  0x40   :  { %3064 = vmatpush3.bf16.msra.mxu0 %v3871_v31 }
  0x41   :  { %3034 = vmatpush3.bf16.msra.mxu1 %v3769_v14  ;;  %875 = vmatprep.subr.bf16.mxu0 %v3350_v48  ;;  %v3393_v14 = vld [vmem:[%s4821_s3 + $0x108] ss:$16 sps:$4 sm:$0xff]  }
  0x42   :  { %3035 = vmatprep.subr.bf16.mxu1 %v3781_v16 }
  0x43   :  { %630 = vmatmul.mubr.bf16.vlgmr.msra.gmra.mxu0 %v3344_v44 }
  0x44   :  { %876 = vmatpush1.bf16.msra.mxu0 %v3348_v47  ;;  %907 = vmatprep.mubr.bf16.mxu0 %v3632_v33 }
  0x45   :  { %3036 = vmatpush3.bf16.msra.mxu1 %v3793_v18  ;;  %877 = vmatprep.subr.bf16.mxu0 %v3356_v52 }
  0x46   :  { %3037 = vmatprep.subr.bf16.mxu1 %v3805_v20 }
  0x48   :  { %878 = vmatpush1.bf16.msra.mxu0 %v3354_v51 }
  0x49   :  { %3038 = vmatpush3.bf16.msra.mxu1 %v3817_v22  ;;  %879 = vmatprep.subr.bf16.mxu0 %v3362_v55 }
  0x4a   :  { %3039 = vmatprep.subr.bf16.mxu1 %v3829_v24 }
  0x4c   :  { %880 = vmatpush1.bf16.msra.mxu0 %v3360_v57 }
  0x4d   :  { %3040 = vmatpush3.bf16.msra.mxu1 %v3841_v26  ;;  %881 = vmatprep.subr.bf16.mxu0 %v3368_v59 }
  0x4e   :  { %3041 = vmatprep.subr.bf16.mxu1 %v3853_v28 }
  0x50   :  { %882 = vmatpush1.bf16.msra.mxu0 %v3366_v61 }
  0x51   :  { %3042 = vmatpush3.bf16.msra.mxu1 %v3865_v30  ;;  %883 = vmatprep.subr.bf16.mxu0 %v3374_v63 }
  0x52   :  { %3239 = vmatprep.subr.bf16.mxu1 %v3630_v36 }
  0x54   :  { %589 = vmatmul.mubr.bf16.vlgmr.msra.gmra.mxu1 %v3341_v45  ;;  %884 = vmatpush1.bf16.msra.mxu0 %v3372_v1 }
  0x55   :  { %3240 = vmatpush3.bf16.msra.mxu1 %v3892_v37  ;;  %3247 = vmatprep.mubr.msk.bf16.mxu1 %vm3631_vm0, %v3630_v36 }
  0x56   :  { %3241 = vmatprep.subr.bf16.mxu1 %v3630_v36  ;;  %885 = vmatprep.subr.bf16.mxu0 %v3380_v4 }
  0x58   :  { %886 = vmatpush1.bf16.msra.mxu0 %v3378_v3 }
  0x59   :  { %3242 = vmatpush3.bf16.msra.mxu1 %v3899_v38  ;;  %887 = vmatprep.subr.bf16.mxu0 %v3386_v7 }
  0x5a   :  { %3243 = vmatprep.subr.bf16.mxu1 %v3630_v36 }
  0x5c   :  { %888 = vmatpush1.bf16.msra.mxu0 %v3384_v9 }
  0x5d   :  { %3244 = vmatpush3.bf16.msra.mxu1 %v3908_v39  ;;  %889 = vmatprep.subr.bf16.mxu0 %v3392_v11 }
  0x5e   :  { %3245 = vmatprep.subr.bf16.mxu1 %v3630_v36 }
  0x60   :  { %890 = vmatpush1.bf16.msra.mxu0 %v3390_v13 }
  0x61   :  { %3246 = vmatpush3.bf16.msra.mxu1 %v3920_v41  ;;  %1121 = vmatprep.subr.bf16.mxu0 %v3398_v15 }
  0x62   :  { %918 = vmatprep.subr.bf16.mxu1 %v3353_v50 }
  0x64   :  { %3248 = vmatmul.mubr.msk.bf16.vlgmr.msra.gmra.mxu1 %vm359_vm1, %v3347_v46 }
  0x65   :  { %919 = vmatpush1.bf16.msra.mxu1 %v3351_v49  ;;  %950 = vmatprep.mubr.bf16.mxu1 %v3632_v33  ;;  %v4086_v49 = vld [vmem:[%s4822_s2] ss:$0 sm:$0xff] }
  0x66   :  { %920 = vmatprep.subr.bf16.mxu1 %v3359_v54 }
  0x69   :  { %921 = vmatpush1.bf16.msra.mxu1 %v3357_v53 }
  0x6a   :  { %922 = vmatprep.subr.bf16.mxu1 %v3365_v56 }
  0x6d   :  { %923 = vmatpush1.bf16.msra.mxu1 %v3363_v58 }
  0x6e   :  { %924 = vmatprep.subr.bf16.mxu1 %v3371_v60 }
  0x71   :  { %925 = vmatpush1.bf16.msra.mxu1 %v3369_v62 }
  0x72   :  { %926 = vmatprep.subr.bf16.mxu1 %v3377_v0 }
  0x75   :  { %927 = vmatpush1.bf16.msra.mxu1 %v3375_v2 }
  0x76   :  { %928 = vmatprep.subr.bf16.mxu1 %v3383_v6 }
  0x79   :  { %929 = vmatpush1.bf16.msra.mxu1 %v3381_v5 }
  0x7a   :  { %930 = vmatprep.subr.bf16.mxu1 %v3389_v8 }
  0x7d   :  { %931 = vmatpush1.bf16.msra.mxu1 %v3387_v10 }
  0x7e   :  { %932 = vmatprep.subr.bf16.mxu1 %v3395_v12 }
  0x81   :  { %933 = vmatpush1.bf16.msra.mxu1 %v3393_v14 }
  0x82   :  { %1164 = vmatprep.subr.bf16.mxu1 %v3401_v32 }
  0xe3   :  { %v2994_v34 = vpop.f32.mrf.mxu0 }
  0xe4   :  { %v3016_v35 = vpop.f32.mrf.mxu1 }
  0xe5   :  { %v2995_v40 = vpop.f32.mrf.mxu0 }
  0xe6   :  { %v3017_v42 = vpop.f32.mrf.mxu1  ;;  %v2996_v47 = vadd.f32 %v2995_v40, %v2994_v34 }
  0xe7   :  { %v3018_v43 = vadd.f32 %v3017_v42, %v3016_v35  ;;  %v2997_v44 = vpop.f32.mrf.mxu0 }
  0xe8   :  { %v3019_v45 = vpop.f32.mrf.mxu1  ;;  %v398_v51 = vadd.f32 %v2996_v47, %v4086_v49  ;;  %v3396_v47 = vld [vmem:[%s4821_s3 + $0xe0] ss:$16 sps:$4 sm:$0xff]  }
  0xe9   :  { %v2998_v50 = vpop.f32.mrf.mxu0 }
  0xea   :  { %v3020_v46 = vpop.f32.mrf.mxu1  ;;  %v2999_v52 = vadd.f32 %v2998_v50, %v2997_v44  ;;  %v439_v54 = vadd.f32 %v3018_v43, %v398_v51  ;;  %v3404_v51 = vld [vmem:[%s4821_s3 + $0xc4] ss:$16 sps:$4 sm:$0xff]  }
  0xeb   :  { %v3021_v48 = vadd.f32 %v3020_v46, %v3019_v45 }
  0xec   :  { %v401_v53 = vadd.f32 %v2999_v52, %v4086_v49  ;;  %v3407_v52 = vld [vmem:[%s4821_s3 + $0xcc] ss:$16 sps:$4 sm:$0xff]  }
  0xee   :  { %v442_v58 = vadd.f32 %v3021_v48, %v401_v53  ;;  %v3399_v48 = vld [vmem:[%s4821_s3 + $0xe8] ss:$16 sps:$4 sm:$0xff]   ;;  %v3402_v53 = vld [vmem:[%s4821_s3 + $0xc0] ss:$16 sps:$4 sm:$0xff]  }
  0xf4   :  { %v479_v55 = vpop.f32.mrf.mxu1 }
  0xf5   :  { %v480_v56 = vadd.f32 %v479_v55, %v439_v54  ;;  %v3405_v54 = vld [vmem:[%s4821_s3 + $0xc8] ss:$16 sps:$4 sm:$0xff]   ;;  %v3410_v55 = vld [vmem:[%s4821_s3 + $0xa4] ss:$16 sps:$4 sm:$0xff]  }
  0xf6   :  { %v3237_v57 = vpop.f32.mrf.mxu1 }
  0xf7   :  { %v486_v62 = vmax.f32 %v480_v56, 0.0  ;;  %v3413_v56 = vld [vmem:[%s4821_s3 + $0xac] ss:$16 sps:$4 sm:$0xff]   ;;  %v3408_v57 = vld [vmem:[%s4821_s3 + $0xa0] ss:$16 sps:$4 sm:$0xff]  }
  0xf8   :  { %v482_v59 = vpop.f32.mrf.mxu1 }
  0xf9   :  { %v483_v60 = vadd.f32 %v482_v59, %v442_v58  ;;  %v3411_v58 = vld [vmem:[%s4821_s3 + $0xa8] ss:$16 sps:$4 sm:$0xff]   ;;  %v3416_v59 = vld [vmem:[%s4821_s3 + $0x84] ss:$16 sps:$4 sm:$0xff]  }
  0xfa   :  { %v3238_v61 = vpop.f32.mrf.mxu1 }
  0xfb   :  { %v487_v63 = vmax.f32 %v483_v60, 0.0  ;;  %v3419_v60 = vld [vmem:[%s4821_s3 + $0x8c] ss:$16 sps:$4 sm:$0xff]   ;;  %v3414_v61 = vld [vmem:[%s4821_s3 + $0x80] ss:$16 sps:$4 sm:$0xff]  }
  0xfd   :  { %v4090_v0 = vpack.c.bf16 %v487_v63, %v486_v62  ;;  %v3417_v62 = vld [vmem:[%s4821_s3 + $0x88] ss:$16 sps:$4 sm:$0xff]   ;;  %v3422_v63 = vld [vmem:[%s4821_s3 + $0x64] ss:$16 sps:$4 sm:$0xff]  }
 0x103   :  { %v3065_v2 = vpop.f32.mrf.mxu0 }
 0x105   :  { %v3066_v5 = vpop.f32.mrf.mxu0 }
 0x106   :  { %v3067_v12 = vadd.f32 %v3066_v5, %v3065_v2  ;;  %v3420_v2 = vld [vmem:[%s4821_s3 + $0x60] ss:$16 sps:$4 sm:$0xff]   ;;  %v3431_v5 = vld [vmem:[%s4821_s3 + $0x4c] ss:$16 sps:$4 sm:$0xff]  }
 0x107   :  { %v3068_v7 = vpop.f32.mrf.mxu0 }
 0x109   :  { %v3069_v10 = vpop.f32.mrf.mxu0 }
 0x10a   :  { %v3070_v14 = vadd.f32 %v3069_v10, %v3068_v7  ;;  %v3429_v7 = vld [vmem:[%s4821_s3 + $0x48] ss:$16 sps:$4 sm:$0xff]   ;;  %v3432_v10 = vld [vmem:[%s4821_s3 + $0x20] ss:$16 sps:$4 sm:$0xff]  }
 0x114   :  { %v3043_v1 = vpop.f32.mrf.mxu1 }
 0x116   :  { %v3044_v3 = vpop.f32.mrf.mxu1 }
 0x117   :  { %v3045_v8 = vadd.f32 %v3044_v3, %v3043_v1  ;;  %v3425_v1 = vld [vmem:[%s4821_s3 + $0x6c] ss:$16 sps:$4 sm:$0xff]   ;;  %v3423_v3 = vld [vmem:[%s4821_s3 + $0x68] ss:$16 sps:$4 sm:$0xff]  }
 0x118   :  { %v3046_v4 = vpop.f32.mrf.mxu1 }
 0x119   :  { %v591_v11 = vadd.f32 %v3045_v8, %v4086_v49  ;;  %v3434_v8 = vld [vmem:[%s4821_s3 + $0x24] ss:$16 sps:$4 sm:$0xff]  }
 0x11a   :  { %v3047_v6 = vpop.f32.mrf.mxu1 }
 0x11b   :  { %v3048_v9 = vadd.f32 %v3047_v6, %v3046_v4  ;;  %v632_v32 = vadd.f32 %v3067_v12, %v591_v11  ;;  %v3428_v4 = vld [vmem:[%s4821_s3 + $0x44] ss:$16 sps:$4 sm:$0xff]   ;;  %v3426_v6 = vld [vmem:[%s4821_s3 + $0x40] ss:$16 sps:$4 sm:$0xff]   ;;  %v3435_v11 = vld [vmem:[%s4821_s3 + $0x28] ss:$16 sps:$4 sm:$0xff]  }
 0x11c   :  { %v3440_v12 = vld [vmem:[%s4821_s3 + $0x4] ss:$16 sps:$4 sm:$0xff]  }
 0x11d   :  { %v594_v13 = vadd.f32 %v3048_v9, %v4086_v49  ;;  %v3437_v9 = vld [vmem:[%s4821_s3 + $0x2c] ss:$16 sps:$4 sm:$0xff]  }
 0x11f   :  { %v635_v40 = vadd.f32 %v3070_v14, %v594_v13  ;;  %v3443_v13 = vld [vmem:[%s4821_s3 + $0xc] ss:$16 sps:$4 sm:$0xff]   ;;  %v3438_v14 = vld [vmem:[%s4821_s3] ss:$16 sps:$4 sm:$0xff]  }
 0x124   :  { %v672_v15 = vpop.f32.mrf.mxu1 }
 0x125   :  { %v673_v35 = vadd.f32 %v672_v15, %v632_v32  ;;  %v3441_v15 = vld [vmem:[%s4821_s3 + $0x8] ss:$16 sps:$4 sm:$0xff]  }
 0x126   :  { %v3249_v34 = vpop.f32.mrf.mxu1  ;;  %v4189_v32 = vld [vmem:[%s4819_s1 + $0x78] sm:$0xff]  }
 0x127   :  { %v679_v45 = vmax.f32 %v673_v35, 0.0  ;;  %v4195_v34 = vld [vmem:[%s4819_s1 + $0xf8] sm:$0xff]   ;;  %v3446_v35 = vld [vmem:[%s4820_s0 + $0x54] ss:$20 sps:$4 sm:$0xff]  }
 0x128   :  { %v675_v42 = vpop.f32.mrf.mxu1 }
 0x129   :  { %v676_v43 = vadd.f32 %v675_v42, %v635_v40  ;;  %v3449_v40 = vld [vmem:[%s4820_s0 + $0x5c] ss:$20 sps:$4 sm:$0xff]  }
 0x12a   :  { %v3250_v44 = vpop.f32.mrf.mxu1  ;;  %v4209_v42 = vld [vmem:[%s4819_s1 + $0x38] sm:$0xff]  }
 0x12b   :  { %v680_v46 = vmax.f32 %v676_v43, 0.0  ;;  %v4215_v43 = vld [vmem:[%s4819_s1 + $0xb8] sm:$0xff]   ;;  %v4221_v44 = vld [vmem:[%s4819_s1 + $0x70] sm:$0xff]  }
 0x12d   :  { %v681_v50 = vpack.c.bf16 %v680_v46, %v679_v45  ;;  %v4233_v45 = vld [vmem:[%s4819_s1 + $0x30] sm:$0xff]  }
 0x12e   :  { %v4239_v46 = vld [vmem:[%s4819_s1 + $0xb0] sm:$0xff]  }
 0x12f   :  { %908 = vmatmul.mubr.bf16.vlgmr.msra.gmra.mxu0 %v681_v50  ;;  %951 = vmatmul.mubr.bf16.vlgmr.msra.gmra.mxu1 %v681_v50  ;;  %v4257_v50 = vld [vmem:[%s4819_s1 + $0x28] sm:$0xff]  }
 0x130   :  { %1122 = vmatpush1.bf16.msra.mxu0 %v3396_v47  ;;  %1165 = vmatpush1.bf16.msra.mxu1 %v3399_v48  ;;  %v4245_v47 = vld [vmem:[%s4819_s1 + $0x68] sm:$0xff]  }
 0x131   :  { %1123 = vmatprep.subr.bf16.mxu0 %v3404_v51  ;;  %1166 = vmatprep.subr.bf16.mxu1 %v3407_v52  ;;  %v4251_v48 = vld [vmem:[%s4819_s1 + $0xe8] sm:$0xff]   ;;  %v4269_v52 = vld [vmem:[%s4819_s1 + $0x60] sm:$0xff]  }
 0x132   :  { %1153 = vmatprep.mubr.bf16.mxu0 %v3632_v33  ;;  %1196 = vmatprep.mubr.bf16.mxu1 %v3632_v33  ;;  %v4263_v51 = vld [vmem:[%s4819_s1 + $0xa8] sm:$0xff]  }
 0x134   :  { %1124 = vmatpush1.bf16.msra.mxu0 %v3402_v53  ;;  %1167 = vmatpush1.bf16.msra.mxu1 %v3405_v54  ;;  %v4275_v53 = vld [vmem:[%s4819_s1 + $0xe0] sm:$0xff]  }
 0x135   :  { %1125 = vmatprep.subr.bf16.mxu0 %v3410_v55  ;;  %1168 = vmatprep.subr.bf16.mxu1 %v3413_v56  ;;  %v4281_v54 = vld [vmem:[%s4819_s1 + $0x20] sm:$0xff]  }
 0x136   :  { %v4287_v55 = vld [vmem:[%s4819_s1 + $0xa0] sm:$0xff]  }
 0x137   :  { %v3475_v56 = vld [vmem:[%s4821_s3 + $0x260] ss:$16 sps:$4 sm:$0xff]  }
 0x138   :  { %1126 = vmatpush1.bf16.msra.mxu0 %v3408_v57  ;;  %1169 = vmatpush1.bf16.msra.mxu1 %v3411_v58  ;;  %v3478_v57 = vld [vmem:[%s4821_s3 + $0x268] ss:$16 sps:$4 sm:$0xff]   ;;  %v3480_v58 = vld [vmem:[%s4821_s3 + $0x26c] ss:$16 sps:$4 sm:$0xff]  }
 0x139   :  { %1127 = vmatprep.subr.bf16.mxu0 %v3416_v59  ;;  %1170 = vmatprep.subr.bf16.mxu1 %v3419_v60  ;;  %v3483_v59 = vld [vmem:[%s4821_s3 + $0x244] ss:$16 sps:$4 sm:$0xff]   ;;  %v3481_v60 = vld [vmem:[%s4821_s3 + $0x240] ss:$16 sps:$4 sm:$0xff]  }
 0x13c   :  { %1128 = vmatpush1.bf16.msra.mxu0 %v3414_v61  ;;  %1171 = vmatpush1.bf16.msra.mxu1 %v3417_v62  ;;  %v3486_v61 = vld [vmem:[%s4821_s3 + $0x24c] ss:$16 sps:$4 sm:$0xff]   ;;  %v3484_v62 = vld [vmem:[%s4821_s3 + $0x248] ss:$16 sps:$4 sm:$0xff]  }
 0x13d   :  { %1129 = vmatprep.subr.bf16.mxu0 %v3422_v63  ;;  %1172 = vmatprep.subr.bf16.mxu1 %v3425_v1  ;;  %v3489_v63 = vld [vmem:[%s4821_s3 + $0x224] ss:$16 sps:$4 sm:$0xff]   ;;  %v3487_v1 = vld [vmem:[%s4821_s3 + $0x220] ss:$16 sps:$4 sm:$0xff]  }
 0x140   :  { %1130 = vmatpush1.bf16.msra.mxu0 %v3420_v2  ;;  %1173 = vmatpush1.bf16.msra.mxu1 %v3423_v3  ;;  %v3492_v2 = vld [vmem:[%s4821_s3 + $0x22c] ss:$16 sps:$4 sm:$0xff]   ;;  %v3490_v3 = vld [vmem:[%s4821_s3 + $0x228] ss:$16 sps:$4 sm:$0xff]  }
 0x141   :  { %1131 = vmatprep.subr.bf16.mxu0 %v3428_v4  ;;  %1174 = vmatprep.subr.bf16.mxu1 %v3431_v5  ;;  %v3495_v4 = vld [vmem:[%s4821_s3 + $0x204] ss:$16 sps:$4 sm:$0xff]   ;;  %v3493_v5 = vld [vmem:[%s4821_s3 + $0x200] ss:$16 sps:$4 sm:$0xff]  }
 0x144   :  { %1132 = vmatpush1.bf16.msra.mxu0 %v3426_v6  ;;  %1175 = vmatpush1.bf16.msra.mxu1 %v3429_v7  ;;  %v3498_v6 = vld [vmem:[%s4821_s3 + $0x20c] ss:$16 sps:$4 sm:$0xff]   ;;  %v3496_v7 = vld [vmem:[%s4821_s3 + $0x208] ss:$16 sps:$4 sm:$0xff]  }
 0x145   :  { %1133 = vmatprep.subr.bf16.mxu0 %v3434_v8  ;;  %1176 = vmatprep.subr.bf16.mxu1 %v3437_v9 }
 0x148   :  { %1134 = vmatpush1.bf16.msra.mxu0 %v3432_v10  ;;  %1177 = vmatpush1.bf16.msra.mxu1 %v3435_v11 }
 0x149   :  { %1135 = vmatprep.subr.bf16.mxu0 %v3440_v12  ;;  %1178 = vmatprep.subr.bf16.mxu1 %v3443_v13 }
 0x14c   :  { %1136 = vmatpush1.bf16.msra.mxu0 %v3438_v14  ;;  %1179 = vmatpush1.bf16.msra.mxu1 %v3441_v15 }
 0x14d   :  { %3076 = vmatprep.subr.bf16.mxu0 %v4189_v32  ;;  %3098 = vmatprep.subr.bf16.mxu1 %v4195_v34 }
 0x14f   :  { %1154 = vmatmul.mubr.bf16.vlgmr.msra.gmra.mxu0 %v4090_v0  ;;  %1197 = vmatmul.mubr.bf16.vlgmr.msra.gmra.mxu1 %v4090_v0  ;;  %v4227_v0 = vld [vmem:[%s4819_s1 + $0xf0] sm:$0xff]  }
 0x150   :  { %3077 = vmatpush3.bf16.msra.mxu0 %v4209_v42  ;;  %3099 = vmatpush3.bf16.msra.mxu1 %v4215_v43 }
 0x151   :  { %3078 = vmatprep.subr.bf16.mxu0 %v4221_v44  ;;  %3100 = vmatprep.subr.bf16.mxu1 %v4227_v0 }
 0x152   :  { %1274 = vmatprep.mubr.bf16.mxu0 %v3446_v35  ;;  %1315 = vmatprep.mubr.bf16.mxu1 %v3449_v40 }
 0x154   :  { %3079 = vmatpush3.bf16.msra.mxu0 %v4233_v45  ;;  %3101 = vmatpush3.bf16.msra.mxu1 %v4239_v46 }
 0x155   :  { %3080 = vmatprep.subr.bf16.mxu0 %v4245_v47  ;;  %3102 = vmatprep.subr.bf16.mxu1 %v4251_v48 }
 0x158   :  { %3081 = vmatpush3.bf16.msra.mxu0 %v4257_v50  ;;  %3103 = vmatpush3.bf16.msra.mxu1 %v4263_v51 }
 0x159   :  { %3082 = vmatprep.subr.bf16.mxu0 %v4269_v52  ;;  %3104 = vmatprep.subr.bf16.mxu1 %v4275_v53 }
 0x15c   :  { %3083 = vmatpush3.bf16.msra.mxu0 %v4281_v54  ;;  %3105 = vmatpush3.bf16.msra.mxu1 %v4287_v55 }
 0x15d   :  { %3084 = vmatprep.subr.bf16.mxu0 %v3781_v16  ;;  %3106 = vmatprep.subr.bf16.mxu1 %v3787_v17  ;;  %v3444_v16 = vld [vmem:[%s4820_s0 + $0x50] ss:$20 sps:$4 sm:$0xff]   ;;  %v3447_v17 = vld [vmem:[%s4820_s0 + $0x58] ss:$20 sps:$4 sm:$0xff]  }
 0x160   :  { %3085 = vmatpush3.bf16.msra.mxu0 %v3793_v18  ;;  %3107 = vmatpush3.bf16.msra.mxu1 %v3799_v19  ;;  %v3450_v18 = vld [vmem:[%s4820_s0 + $0x60] ss:$20 sps:$4 sm:$0xff]  }
 0x161   :  { %3086 = vmatprep.subr.bf16.mxu0 %v3805_v20  ;;  %3108 = vmatprep.subr.bf16.mxu1 %v3811_v21  ;;  %v3451_v19 = vld [vmem:[%s4821_s3 + $0x2e0] ss:$16 sps:$4 sm:$0xff]   ;;  %v3453_v20 = vld [vmem:[%s4821_s3 + $0x2e4] ss:$16 sps:$4 sm:$0xff]   ;;  %v3454_v21 = vld [vmem:[%s4821_s3 + $0x2e8] ss:$16 sps:$4 sm:$0xff]  }
 0x164   :  { %3087 = vmatpush3.bf16.msra.mxu0 %v3817_v22  ;;  %3109 = vmatpush3.bf16.msra.mxu1 %v3823_v23  ;;  %v3456_v22 = vld [vmem:[%s4821_s3 + $0x2ec] ss:$16 sps:$4 sm:$0xff]   ;;  %v3459_v23 = vld [vmem:[%s4821_s3 + $0x2c4] ss:$16 sps:$4 sm:$0xff]  }
 0x165   :  { %3088 = vmatprep.subr.bf16.mxu0 %v3829_v24  ;;  %3110 = vmatprep.subr.bf16.mxu1 %v3835_v25  ;;  %v3462_v24 = vld [vmem:[%s4821_s3 + $0x2cc] ss:$16 sps:$4 sm:$0xff]   ;;  %v3457_v25 = vld [vmem:[%s4821_s3 + $0x2c0] ss:$16 sps:$4 sm:$0xff]  }
 0x168   :  { %3089 = vmatpush3.bf16.msra.mxu0 %v3841_v26  ;;  %3111 = vmatpush3.bf16.msra.mxu1 %v3847_v27  ;;  %v3460_v26 = vld [vmem:[%s4821_s3 + $0x2c8] ss:$16 sps:$4 sm:$0xff]   ;;  %v3465_v27 = vld [vmem:[%s4821_s3 + $0x2a4] ss:$16 sps:$4 sm:$0xff]  }
 0x169   :  { %3090 = vmatprep.subr.bf16.mxu0 %v3853_v28  ;;  %3112 = vmatprep.subr.bf16.mxu1 %v3859_v29  ;;  %v3463_v28 = vld [vmem:[%s4821_s3 + $0x2a0] ss:$16 sps:$4 sm:$0xff]   ;;  %v3468_v29 = vld [vmem:[%s4821_s3 + $0x2ac] ss:$16 sps:$4 sm:$0xff]  }
 0x16c   :  { %3091 = vmatpush3.bf16.msra.mxu0 %v3865_v30  ;;  %3113 = vmatpush3.bf16.msra.mxu1 %v3871_v31  ;;  %v3466_v30 = vld [vmem:[%s4821_s3 + $0x2a8] ss:$16 sps:$4 sm:$0xff]   ;;  %v3471_v31 = vld [vmem:[%s4821_s3 + $0x284] ss:$16 sps:$4 sm:$0xff]  }
 0x16d   :  { %3251 = vmatprep.subr.bf16.mxu0 %v3630_v36  ;;  %1561 = vmatprep.subr.bf16.mxu1 %v3453_v20 }
 0x16f   :  { %1275 = vmatmul.mubr.bf16.vlgmr.msra.gmra.mxu0 %v3444_v16  ;;  %1316 = vmatmul.mubr.bf16.vlgmr.msra.gmra.mxu1 %v3447_v17 }
 0x170   :  { %3252 = vmatpush3.bf16.msra.mxu0 %v3892_v37  ;;  %3259 = vmatprep.mubr.msk.bf16.mxu0 %vm3631_vm0, %v3630_v36  ;;  %v3469_v37 = vld [vmem:[%s4821_s3 + $0x280] ss:$16 sps:$4 sm:$0xff]  }
 0x171   :  { %3253 = vmatprep.subr.bf16.mxu0 %v3630_v36  ;;  %1593 = vmatprep.mubr.bf16.mxu1 %v3632_v33 }
 0x172   :  { %1562 = vmatpush1.bf16.msra.mxu1 %v3451_v19 }
 0x173   :  { %1563 = vmatprep.subr.bf16.mxu1 %v3459_v23 }
 0x174   :  { %3254 = vmatpush3.bf16.msra.mxu0 %v3899_v38  ;;  %v3474_v38 = vld [vmem:[%s4821_s3 + $0x28c] ss:$16 sps:$4 sm:$0xff]  }
 0x175   :  { %3255 = vmatprep.subr.bf16.mxu0 %v3630_v36 }
 0x176   :  { %1564 = vmatpush1.bf16.msra.mxu1 %v3457_v25 }
 0x177   :  { %1565 = vmatprep.subr.bf16.mxu1 %v3465_v27 }
 0x178   :  { %3256 = vmatpush3.bf16.msra.mxu0 %v3908_v39  ;;  %v3472_v39 = vld [vmem:[%s4821_s3 + $0x288] ss:$16 sps:$4 sm:$0xff]  }
 0x179   :  { %3257 = vmatprep.subr.bf16.mxu0 %v3630_v36 }
 0x17a   :  { %1566 = vmatpush1.bf16.msra.mxu1 %v3463_v28 }
 0x17b   :  { %1567 = vmatprep.subr.bf16.mxu1 %v3471_v31 }
 0x17c   :  { %3258 = vmatpush3.bf16.msra.mxu0 %v3920_v41  ;;  %v3477_v41 = vld [vmem:[%s4821_s3 + $0x264] ss:$16 sps:$4 sm:$0xff]  }
 0x17d   :  { %1604 = vmatprep.subr.bf16.mxu0 %v3456_v22 }
 0x17e   :  { %1568 = vmatpush1.bf16.msra.mxu1 %v3469_v37 }
 0x17f   :  { %3260 = vmatmul.mubr.msk.bf16.vlgmr.msra.gmra.mxu0 %vm359_vm1, %v3450_v18  ;;  %1569 = vmatprep.subr.bf16.mxu1 %v3477_v41 }
 0x180   :  { %1636 = vmatprep.mubr.bf16.mxu0 %v3632_v33  ;;  %1605 = vmatpush1.bf16.msra.mxu0 %v3454_v21 }
 0x181   :  { %1606 = vmatprep.subr.bf16.mxu0 %v3462_v24 }
 0x182   :  { %1570 = vmatpush1.bf16.msra.mxu1 %v3475_v56 }
 0x183   :  { %1571 = vmatprep.subr.bf16.mxu1 %v3483_v59 }
 0x184   :  { %1607 = vmatpush1.bf16.msra.mxu0 %v3460_v26 }
 0x185   :  { %1608 = vmatprep.subr.bf16.mxu0 %v3468_v29 }
 0x186   :  { %1572 = vmatpush1.bf16.msra.mxu1 %v3481_v60 }
 0x187   :  { %1573 = vmatprep.subr.bf16.mxu1 %v3489_v63 }
 0x188   :  { %1609 = vmatpush1.bf16.msra.mxu0 %v3466_v30 }
 0x189   :  { %1610 = vmatprep.subr.bf16.mxu0 %v3474_v38 }
 0x18a   :  { %1574 = vmatpush1.bf16.msra.mxu1 %v3487_v1 }
 0x18b   :  { %1575 = vmatprep.subr.bf16.mxu1 %v3495_v4 }
 0x18c   :  { %1611 = vmatpush1.bf16.msra.mxu0 %v3472_v39 }
 0x18d   :  { %1612 = vmatprep.subr.bf16.mxu0 %v3480_v58 }
 0x18e   :  { %1576 = vmatpush1.bf16.msra.mxu1 %v3493_v5 }
 0x18f   :  { %3125 = vmatprep.subr.bf16.mxu1 %v4189_v32 }
 0x190   :  { %1613 = vmatpush1.bf16.msra.mxu0 %v3478_v57 }
 0x191   :  { %1614 = vmatprep.subr.bf16.mxu0 %v3486_v61 }
 0x194   :  { %1615 = vmatpush1.bf16.msra.mxu0 %v3484_v62 }
 0x195   :  { %1616 = vmatprep.subr.bf16.mxu0 %v3492_v2 }
 0x198   :  { %1617 = vmatpush1.bf16.msra.mxu0 %v3490_v3 }
 0x199   :  { %1618 = vmatprep.subr.bf16.mxu0 %v3498_v6 }
 0x19c   :  { %1619 = vmatpush1.bf16.msra.mxu0 %v3496_v7 }
 0x19d   :  { %3147 = vmatprep.subr.bf16.mxu0 %v4195_v34 }
 0x1ef   :  { %v909_v8 = vpop.f32.mrf.mxu0  ;;  %v952_v9 = vpop.f32.mrf.mxu1 }
 0x1f1   :  { %v911_v10 = vpop.f32.mrf.mxu0  ;;  %v954_v11 = vpop.f32.mrf.mxu1 }
 0x1f3   :  { %v913_v12 = vpop.f32.mrf.mxu0  ;;  %v956_v13 = vpop.f32.mrf.mxu1 }
 0x1f5   :  { %v915_v14 = vpop.f32.mrf.mxu0  ;;  %v958_v15 = vpop.f32.mrf.mxu1 }
 0x20f   :  { %v1155_v35 = vpop.f32.mrf.mxu0  ;;  %v1198_v40 = vpop.f32.mrf.mxu1 }
 0x210   :  { %v4426_v16 = vadd.f32 %v1155_v35, %v909_v8  ;;  %v4428_v17 = vadd.f32 %v1198_v40, %v952_v9  ;;  %v3626_v35 = vld [vmem:[%s4819_s1 + $0x118] sm:$0xff]   ;;  %v3627_v40 = vld [vmem:[%s4819_s1 + $0x110] sm:$0xff]  }
 0x211   :  { %v1157_v18 = vpop.f32.mrf.mxu0  ;;  %v1200_v19 = vpop.f32.mrf.mxu1 }
 0x212   :  { %v4430_v20 = vadd.f32 %v1157_v18, %v911_v10  ;;  %v4432_v32 = vadd.f32 %v1200_v19, %v954_v11  ;;  %v3501_v10 = vld [vmem:[%s4820_s0 + $0x7c] ss:$20 sps:$4 sm:$0xff]   ;;  %v3504_v11 = vld [vmem:[%s4820_s0 + $0x84] ss:$20 sps:$4 sm:$0xff]   ;;  %v3628_v18 = vld [vmem:[%s4819_s1 + $0x108] sm:$0xff]  }
 0x213   :  { %v1159_v34 = vpop.f32.mrf.mxu0  ;;  %v1202_v21 = vpop.f32.mrf.mxu1  ;;  %v3505_v19 = vld [vmem:[%s4820_s0 + $0x88] ss:$20 sps:$4 sm:$0xff]  }
 0x214   :  { %v4434_v22 = vadd.f32 %v1159_v34, %v913_v12  ;;  %v4436_v23 = vadd.f32 %v1202_v21, %v956_v13  ;;  %v3499_v12 = vld [vmem:[%s4820_s0 + $0x78] ss:$20 sps:$4 sm:$0xff]   ;;  %v3502_v13 = vld [vmem:[%s4820_s0 + $0x80] ss:$20 sps:$4 sm:$0xff]  }
 0x215   :  { %v1161_v24 = vpop.f32.mrf.mxu0  ;;  %v1204_v25 = vpop.f32.mrf.mxu1  ;;  %v3629_v34 = vld [vmem:[%s4819_s1 + $0x100] sm:$0xff]  }
 0x216   :  { %v4438_v26 = vadd.f32 %v1161_v24, %v915_v14  ;;  %v4440_v27 = vadd.f32 %v1204_v25, %v958_v15  ;;  %v3624_v14 = vld [vmem:[%s4819_s1] sm:$0xff]   ;;  %v3509_v25 = vld [vmem:[%s4821_s3 + $0x3e8] ss:$16 sps:$4 sm:$0xff]  }
 0x217   :  { %v3625_v15 = vld [vmem:[%s4819_s1 + $0x80] sm:$0xff]  }
 0x218   :  { %v3506_v21 = vld [vmem:[%s4821_s3 + $0x3e0] ss:$16 sps:$4 sm:$0xff]   ;;  %v3508_v24 = vld [vmem:[%s4821_s3 + $0x3e4] ss:$16 sps:$4 sm:$0xff]  }
 0x22f   :  { %v3092_v28 = vpop.f32.mrf.mxu0  ;;  %v3114_v29 = vpop.f32.mrf.mxu1 }
 0x231   :  { %v3093_v30 = vpop.f32.mrf.mxu0  ;;  %v3115_v37 = vpop.f32.mrf.mxu1 }
 0x232   :  { %v3094_v41 = vadd.f32 %v3093_v30, %v3092_v28  ;;  %v3116_v59 = vadd.f32 %v3115_v37, %v3114_v29  ;;  %v3511_v28 = vld [vmem:[%s4821_s3 + $0x3ec] ss:$16 sps:$4 sm:$0xff]   ;;  %v3512_v30 = vld [vmem:[%s4821_s3 + $0x3c0] ss:$16 sps:$4 sm:$0xff]   ;;  %v3520_v37 = vld [vmem:[%s4821_s3 + $0x3a4] ss:$16 sps:$4 sm:$0xff]  }
 0x233   :  { %v3095_v31 = vpop.f32.mrf.mxu0  ;;  %v3117_v39 = vpop.f32.mrf.mxu1  ;;  %v3517_v29 = vld [vmem:[%s4821_s3 + $0x3cc] ss:$16 sps:$4 sm:$0xff]  }
 0x234   :  { %v1277_v58 = vadd.f32 %v3094_v41, %v4086_v49  ;;  %v3521_v41 = vld [vmem:[%s4821_s3 + $0x3a8] ss:$16 sps:$4 sm:$0xff]  }
 0x235   :  { %v3096_v38 = vpop.f32.mrf.mxu0  ;;  %v3118_v57 = vpop.f32.mrf.mxu1 }
 0x236   :  { %v3097_v56 = vadd.f32 %v3096_v38, %v3095_v31  ;;  %v3119_v61 = vadd.f32 %v3118_v57, %v3117_v39  ;;  %v1318_v63 = vadd.f32 %v3116_v59, %v1277_v58  ;;  %v3515_v31 = vld [vmem:[%s4821_s3 + $0x3c8] ss:$16 sps:$4 sm:$0xff]   ;;  %v3523_v38 = vld [vmem:[%s4821_s3 + $0x3ac] ss:$16 sps:$4 sm:$0xff]   ;;  %v3518_v39 = vld [vmem:[%s4821_s3 + $0x3a0] ss:$16 sps:$4 sm:$0xff]  }
 0x237   :  { %v3529_v57 = vld [vmem:[%s4821_s3 + $0x38c] ss:$16 sps:$4 sm:$0xff]   ;;  %v3524_v58 = vld [vmem:[%s4821_s3 + $0x380] ss:$16 sps:$4 sm:$0xff]   ;;  %v3527_v59 = vld [vmem:[%s4821_s3 + $0x388] ss:$16 sps:$4 sm:$0xff]  }
 0x238   :  { %v1280_v60 = vadd.f32 %v3097_v56, %v4086_v49  ;;  %v3526_v56 = vld [vmem:[%s4821_s3 + $0x384] ss:$16 sps:$4 sm:$0xff]  }
 0x23a   :  { %v1321_v3 = vadd.f32 %v3119_v61, %v1280_v60  ;;  %v3530_v60 = vld [vmem:[%s4821_s3 + $0x360] ss:$16 sps:$4 sm:$0xff]   ;;  %v3532_v61 = vld [vmem:[%s4821_s3 + $0x364] ss:$16 sps:$4 sm:$0xff]  }
 0x23f   :  { %v1358_v62 = vpop.f32.mrf.mxu0 }
 0x240   :  { %v1359_v2 = vadd.f32 %v1358_v62, %v1318_v63  ;;  %v3533_v62 = vld [vmem:[%s4821_s3 + $0x368] ss:$16 sps:$4 sm:$0xff]   ;;  %v3535_v63 = vld [vmem:[%s4821_s3 + $0x36c] ss:$16 sps:$4 sm:$0xff]  }
 0x241   :  { %v3261_v1 = vpop.f32.mrf.mxu0 }
 0x242   :  { %v1365_v7 = vmax.f32 %v1359_v2, 0.0  ;;  %v3538_v1 = vld [vmem:[%s4821_s3 + $0x344] ss:$16 sps:$4 sm:$0xff]   ;;  %v3541_v2 = vld [vmem:[%s4821_s3 + $0x34c] ss:$16 sps:$4 sm:$0xff]  }
 0x243   :  { %v1361_v4 = vpop.f32.mrf.mxu0 }
 0x244   :  { %v1362_v5 = vadd.f32 %v1361_v4, %v1321_v3  ;;  %v3536_v3 = vld [vmem:[%s4821_s3 + $0x340] ss:$16 sps:$4 sm:$0xff]   ;;  %v3539_v4 = vld [vmem:[%s4821_s3 + $0x348] ss:$16 sps:$4 sm:$0xff]  }
 0x245   :  { %v3262_v6 = vpop.f32.mrf.mxu0 }
 0x246   :  { %v1366_v8 = vmax.f32 %v1362_v5, 0.0  ;;  %v3544_v5 = vld [vmem:[%s4821_s3 + $0x324] ss:$16 sps:$4 sm:$0xff]   ;;  %v3547_v6 = vld [vmem:[%s4821_s3 + $0x32c] ss:$16 sps:$4 sm:$0xff]  }
 0x248   :  { %v1367_v9 = vpack.c.bf16 %v1366_v8, %v1365_v7  ;;  %v3542_v7 = vld [vmem:[%s4821_s3 + $0x320] ss:$16 sps:$4 sm:$0xff]   ;;  %v3545_v8 = vld [vmem:[%s4821_s3 + $0x328] ss:$16 sps:$4 sm:$0xff]  }
 0x24a   :  { %1594 = vmatmul.mubr.bf16.vlgmr.msra.gmra.mxu1 %v1367_v9  ;;  %1637 = vmatmul.mubr.bf16.vlgmr.msra.gmra.mxu0 %v1367_v9  ;;  %v3550_v9 = vld [vmem:[%s4821_s3 + $0x304] ss:$16 sps:$4 sm:$0xff]  }
 0x24b   :  { %3126 = vmatpush3.bf16.msra.mxu1 %v4209_v42  ;;  %3148 = vmatpush3.bf16.msra.mxu0 %v4215_v43  ;;  %v3610_v42 = vld [vmem:[%s4819_s1 + $0x58] sm:$0xff]  }
 0x24c   :  { %3127 = vmatprep.subr.bf16.mxu1 %v4221_v44  ;;  %3149 = vmatprep.subr.bf16.mxu0 %v4227_v0  ;;  %v3611_v43 = vld [vmem:[%s4819_s1 + $0xd8] sm:$0xff]  }
 0x24d   :  { %1722 = vmatprep.mubr.bf16.mxu1 %v3501_v10  ;;  %1763 = vmatprep.mubr.bf16.mxu0 %v3504_v11  ;;  %v3612_v44 = vld [vmem:[%s4819_s1 + $0x18] sm:$0xff]   ;;  %v3548_v11 = vld [vmem:[%s4821_s3 + $0x300] ss:$16 sps:$4 sm:$0xff]  }
 0x24e   :  { %v3613_v0 = vld [vmem:[%s4819_s1 + $0x98] sm:$0xff]  }
 0x24f   :  { %3128 = vmatpush3.bf16.msra.mxu1 %v4233_v45  ;;  %3150 = vmatpush3.bf16.msra.mxu0 %v4239_v46  ;;  %v3614_v45 = vld [vmem:[%s4819_s1 + $0x50] sm:$0xff]   ;;  %v3553_v10 = vld [vmem:[%s4821_s3 + $0x30c] ss:$16 sps:$4 sm:$0xff]  }
 0x250   :  { %3129 = vmatprep.subr.bf16.mxu1 %v4245_v47  ;;  %3151 = vmatprep.subr.bf16.mxu0 %v4251_v48  ;;  %v3615_v46 = vld [vmem:[%s4819_s1 + $0xd0] sm:$0xff]  }
 0x251   :  { %v3616_v47 = vld [vmem:[%s4819_s1 + $0x10] sm:$0xff]  }
 0x252   :  { %v3617_v48 = vld [vmem:[%s4819_s1 + $0x90] sm:$0xff]  }
 0x253   :  { %3130 = vmatpush3.bf16.msra.mxu1 %v4257_v50  ;;  %3152 = vmatpush3.bf16.msra.mxu0 %v4263_v51  ;;  %v3618_v50 = vld [vmem:[%s4819_s1 + $0x48] sm:$0xff]  }
 0x254   :  { %3131 = vmatprep.subr.bf16.mxu1 %v4269_v52  ;;  %3153 = vmatprep.subr.bf16.mxu0 %v4275_v53  ;;  %v3619_v51 = vld [vmem:[%s4819_s1 + $0xc8] sm:$0xff]  }
 0x255   :  { %v3620_v52 = vld [vmem:[%s4819_s1 + $0x8] sm:$0xff]  }
 0x256   :  { %v3621_v53 = vld [vmem:[%s4819_s1 + $0x88] sm:$0xff]  }
 0x257   :  { %3132 = vmatpush3.bf16.msra.mxu1 %v4281_v54  ;;  %3154 = vmatpush3.bf16.msra.mxu0 %v4287_v55  ;;  %v3622_v54 = vld [vmem:[%s4819_s1 + $0x40] sm:$0xff]  }
 0x258   :  { %3133 = vmatprep.subr.bf16.mxu1 %v3610_v42  ;;  %3155 = vmatprep.subr.bf16.mxu0 %v3611_v43  ;;  %v3623_v55 = vld [vmem:[%s4819_s1 + $0xc0] sm:$0xff]   ;;  %v3551_v42 = vld [vmem:[%s4821_s3 + $0x308] ss:$16 sps:$4 sm:$0xff]  }
 0x259   :  { %v3554_v43 = vld [vmem:[%s4823_s5 + $0x78] sm:$0xff]  }
 0x25b   :  { %3134 = vmatpush3.bf16.msra.mxu1 %v3612_v44  ;;  %3156 = vmatpush3.bf16.msra.mxu0 %v3613_v0  ;;  %v3555_v44 = vld [vmem:[%s4823_s5 + $0xf8] sm:$0xff]  }
 0x25c   :  { %3135 = vmatprep.subr.bf16.mxu1 %v3614_v45  ;;  %3157 = vmatprep.subr.bf16.mxu0 %v3615_v46 }
 0x25f   :  { %3136 = vmatpush3.bf16.msra.mxu1 %v3616_v47  ;;  %3158 = vmatpush3.bf16.msra.mxu0 %v3617_v48 }
 0x260   :  { %3137 = vmatprep.subr.bf16.mxu1 %v3618_v50  ;;  %3159 = vmatprep.subr.bf16.mxu0 %v3619_v51 }
 0x263   :  { %3138 = vmatpush3.bf16.msra.mxu1 %v3620_v52  ;;  %3160 = vmatpush3.bf16.msra.mxu0 %v3621_v53 }
 0x264   :  { %3139 = vmatprep.subr.bf16.mxu1 %v3622_v54  ;;  %3161 = vmatprep.subr.bf16.mxu0 %v3623_v55 }
 0x267   :  { %3140 = vmatpush3.bf16.msra.mxu1 %v3624_v14  ;;  %3162 = vmatpush3.bf16.msra.mxu0 %v3625_v15 }
 0x268   :  { %3263 = vmatprep.subr.bf16.mxu1 %v3630_v36  ;;  %2009 = vmatprep.subr.bf16.mxu0 %v3508_v24 }
 0x26a   :  { %1723 = vmatmul.mubr.bf16.vlgmr.msra.gmra.mxu1 %v3499_v12  ;;  %1764 = vmatmul.mubr.bf16.vlgmr.msra.gmra.mxu0 %v3502_v13 }
 0x26b   :  { %3264 = vmatpush3.bf16.msra.mxu1 %v3626_v35  ;;  %3271 = vmatprep.mubr.msk.bf16.mxu1 %vm3631_vm0, %v3630_v36 }
 0x26c   :  { %3265 = vmatprep.subr.bf16.mxu1 %v3630_v36  ;;  %2041 = vmatprep.mubr.bf16.mxu0 %v3632_v33 }
 0x26d   :  { %2010 = vmatpush1.bf16.msra.mxu0 %v3506_v21 }
 0x26f   :  { %3266 = vmatpush3.bf16.msra.mxu1 %v3627_v40 }
 0x270   :  { %3267 = vmatprep.subr.bf16.mxu1 %v3630_v36 }
 0x273   :  { %3268 = vmatpush3.bf16.msra.mxu1 %v3628_v18 }
 0x274   :  { %3269 = vmatprep.subr.bf16.mxu1 %v3630_v36 }
 0x277   :  { %3270 = vmatpush3.bf16.msra.mxu1 %v3629_v34 }
 0x278   :  { %2052 = vmatprep.subr.bf16.mxu1 %v3511_v28 }
 0x27a   :  { %3272 = vmatmul.mubr.msk.bf16.vlgmr.msra.gmra.mxu1 %vm359_vm1, %v3505_v19 }
 0x27b   :  { %2084 = vmatprep.mubr.bf16.mxu1 %v3632_v33  ;;  %v3514_v33 = vld [vmem:[%s4821_s3 + $0x3c4] ss:$16 sps:$4 sm:$0xff]   ;;  %2053 = vmatpush1.bf16.msra.mxu1 %v3509_v25 }
 0x27c   :  { %2011 = vmatprep.subr.bf16.mxu0 %v3514_v33  ;;  %2054 = vmatprep.subr.bf16.mxu1 %v3517_v29 }
 0x27d   :  { %2012 = vmatpush1.bf16.msra.mxu0 %v3512_v30 }
 0x27e   :  { %2013 = vmatprep.subr.bf16.mxu0 %v3520_v37 }
 0x27f   :  { %2055 = vmatpush1.bf16.msra.mxu1 %v3515_v31 }
 0x280   :  { %2056 = vmatprep.subr.bf16.mxu1 %v3523_v38 }
 0x281   :  { %2014 = vmatpush1.bf16.msra.mxu0 %v3518_v39 }
 0x282   :  { %2015 = vmatprep.subr.bf16.mxu0 %v3526_v56  ;;  %v3556_v56 = vld [vmem:[%s4823_s5 + $0x38] sm:$0xff]  }
 0x283   :  { %2057 = vmatpush1.bf16.msra.mxu1 %v3521_v41 }
 0x284   :  { %2058 = vmatprep.subr.bf16.mxu1 %v3529_v57  ;;  %v3557_v57 = vld [vmem:[%s4823_s5 + $0xb8] sm:$0xff]  }
 0x285   :  { %2016 = vmatpush1.bf16.msra.mxu0 %v3524_v58  ;;  %v3558_v58 = vld [vmem:[%s4823_s5 + $0x70] sm:$0xff]  }
 0x286   :  { %2017 = vmatprep.subr.bf16.mxu0 %v3532_v61  ;;  %v3561_v61 = vld [vmem:[%s4823_s5 + $0xb0] sm:$0xff]  }
 0x287   :  { %2059 = vmatpush1.bf16.msra.mxu1 %v3527_v59  ;;  %v3559_v59 = vld [vmem:[%s4823_s5 + $0xf0] sm:$0xff]  }
 0x288   :  { %2060 = vmatprep.subr.bf16.mxu1 %v3535_v63  ;;  %v3563_v63 = vld [vmem:[%s4823_s5 + $0xe8] sm:$0xff]  }
 0x289   :  { %2018 = vmatpush1.bf16.msra.mxu0 %v3530_v60  ;;  %v3560_v60 = vld [vmem:[%s4823_s5 + $0x30] sm:$0xff]  }
 0x28a   :  { %2019 = vmatprep.subr.bf16.mxu0 %v3538_v1  ;;  %v3564_v1 = vld [vmem:[%s4823_s5 + $0x28] sm:$0xff]  }
 0x28b   :  { %2061 = vmatpush1.bf16.msra.mxu1 %v3533_v62  ;;  %v3562_v62 = vld [vmem:[%s4823_s5 + $0x68] sm:$0xff]  }
 0x28c   :  { %2062 = vmatprep.subr.bf16.mxu1 %v3541_v2  ;;  %v3565_v2 = vld [vmem:[%s4823_s5 + $0xa8] sm:$0xff]  }
 0x28d   :  { %2020 = vmatpush1.bf16.msra.mxu0 %v3536_v3  ;;  %v3566_v3 = vld [vmem:[%s4823_s5 + $0x60] sm:$0xff]  }
 0x28e   :  { %2021 = vmatprep.subr.bf16.mxu0 %v3544_v5  ;;  %v3568_v5 = vld [vmem:[%s4823_s5 + $0x20] sm:$0xff]  }
 0x28f   :  { %2063 = vmatpush1.bf16.msra.mxu1 %v3539_v4  ;;  %v3567_v4 = vld [vmem:[%s4823_s5 + $0xe0] sm:$0xff]  }
 0x290   :  { %2064 = vmatprep.subr.bf16.mxu1 %v3547_v6  ;;  %v3569_v6 = vld [vmem:[%s4823_s5 + $0xa0] sm:$0xff]  }
 0x291   :  { %2022 = vmatpush1.bf16.msra.mxu0 %v3542_v7  ;;  %v3570_v7 = vld [vmem:[%s4823_s5 + $0x58] sm:$0xff]  }
 0x292   :  { %2023 = vmatprep.subr.bf16.mxu0 %v3550_v9  ;;  %v3572_v9 = vld [vmem:[%s4823_s5 + $0x18] sm:$0xff]  }
 0x293   :  { %2065 = vmatpush1.bf16.msra.mxu1 %v3545_v8  ;;  %v3571_v8 = vld [vmem:[%s4823_s5 + $0xd8] sm:$0xff]  }
 0x294   :  { %2066 = vmatprep.subr.bf16.mxu1 %v3553_v10  ;;  %v3573_v10 = vld [vmem:[%s4823_s5 + $0x98] sm:$0xff]  }
 0x295   :  { %2024 = vmatpush1.bf16.msra.mxu0 %v3548_v11  ;;  %v3574_v11 = vld [vmem:[%s4823_s5 + $0x50] sm:$0xff]  }
 0x296   :  { %3174 = vmatprep.subr.bf16.mxu0 %v3554_v43  ;;  %v3576_v43 = vld [vmem:[%s4823_s5 + $0x10] sm:$0xff]  }
 0x297   :  { %2067 = vmatpush1.bf16.msra.mxu1 %v3551_v42  ;;  %v3575_v42 = vld [vmem:[%s4823_s5 + $0xd0] sm:$0xff]  }
 0x298   :  { %3196 = vmatprep.subr.bf16.mxu1 %v3555_v44  ;;  %v3577_v44 = vld [vmem:[%s4823_s5 + $0x90] sm:$0xff]  }
 0x30a   :  { %v1595_v0 = vpop.f32.mrf.mxu1  ;;  %v1638_v45 = vpop.f32.mrf.mxu0 }
 0x30b   :  { %v4645_v46 = vadd.f32 %v1595_v0, %v4426_v16  ;;  %v4648_v47 = vadd.f32 %v1638_v45, %v4428_v17  ;;  %v3578_v0 = vld [vmem:[%s4823_s5 + $0x48] sm:$0xff]  }
 0x30c   :  { %v1597_v48 = vpop.f32.mrf.mxu1  ;;  %v1640_v50 = vpop.f32.mrf.mxu0  ;;  %v3579_v45 = vld [vmem:[%s4823_s5 + $0xc8] sm:$0xff]  }
 0x30d   :  { %v4651_v51 = vadd.f32 %v1597_v48, %v4430_v20  ;;  %v4654_v52 = vadd.f32 %v1640_v50, %v4432_v32  ;;  %v3580_v48 = vld [vmem:[%s4823_s5 + $0x8] sm:$0xff]  }
 0x30e   :  { %v1599_v53 = vpop.f32.mrf.mxu1  ;;  %v1642_v54 = vpop.f32.mrf.mxu0  ;;  %v3581_v50 = vld [vmem:[%s4823_s5 + $0x88] sm:$0xff]  }
 0x30f   :  { %v4657_v55 = vadd.f32 %v1599_v53, %v4434_v22  ;;  %v4660_v12 = vadd.f32 %v1642_v54, %v4436_v23  ;;  %v3582_v53 = vld [vmem:[%s4823_s5 + $0x40] sm:$0xff]  }
 0x310   :  { %v1601_v16 = vpop.f32.mrf.mxu1  ;;  %v1644_v13 = vpop.f32.mrf.mxu0  ;;  %v3583_v54 = vld [vmem:[%s4823_s5 + $0xc0] sm:$0xff]  }
 0x311   :  { %v4663_v17 = vadd.f32 %v1601_v16, %v4438_v26  ;;  %v4666_v14 = vadd.f32 %v1644_v13, %v4440_v27  ;;  %v3584_v16 = vld [vmem:[%s4823_s5] sm:$0xff]  }
 0x312   :  { %v3585_v13 = vld [vmem:[%s4823_s5 + $0x80] sm:$0xff]  }
 0x32a   :  { %v3141_v20 = vpop.f32.mrf.mxu1  ;;  %v3163_v15 = vpop.f32.mrf.mxu0 }
 0x32c   :  { %v3142_v32 = vpop.f32.mrf.mxu1  ;;  %v3164_v40 = vpop.f32.mrf.mxu0 }
 0x32d   :  { %v3143_v22 = vadd.f32 %v3142_v32, %v3141_v20  ;;  %v3165_v24 = vadd.f32 %v3164_v40, %v3163_v15  ;;  %v2105_v20 = vlaneseq  ;;  %v2103_v40 = vld [vmem:[%s4825_s4] sm:$0xf] }
 0x32e   :  { %v3144_v35 = vpop.f32.mrf.mxu1  ;;  %v3166_v19 = vpop.f32.mrf.mxu0 }
 0x32f   :  { %v1725_v23 = vadd.f32 %v3143_v22, %v4086_v49  ;;  %v2106_v15 = vshrl.u32 %v2105_v20, 7 }
 0x330   :  { %v3145_v18 = vpop.f32.mrf.mxu1  ;;  %v3167_v21 = vpop.f32.mrf.mxu0 }
 0x331   :  { %v3146_v34 = vadd.f32 %v3145_v18, %v3144_v35  ;;  %v3168_v26 = vadd.f32 %v3167_v21, %v3166_v19  ;;  %v1766_v33 = vadd.f32 %v3165_v24, %v1725_v23  ;;  %v2107_v32 = vsub.s32 0, %v2106_v15 }
 0x332   :  { %v2115_v35 = vsub.s32 2, %v2106_v15  ;;  %v2111_v18 = vsub.s32 1, %v2106_v15  ;;  %v2119_v19 = vsub.s32 3, %v2106_v15 }
 0x333   :  { %v1728_v25 = vadd.f32 %v3146_v34, %v4086_v49  ;;  %v2108_v23 = vrot.slane %v2103_v40, %v2107_v32 }
 0x335   :  { %v1769_v30 = vadd.f32 %v3168_v26, %v1728_v25  ;;  %v2116_v25 = vrot.slane %v2103_v40, %v2115_v35 }
 0x33a   :  { %v1806_v28 = vpop.f32.mrf.mxu1 }
 0x33b   :  { %v1807_v29 = vadd.f32 %v1806_v28, %v1766_v33 }
 0x33c   :  { %v3273_v27 = vpop.f32.mrf.mxu1 }
 0x33d   :  { %v1813_v39 = vmax.f32 %v1807_v29, 0.0  ;;  %v2112_v27 = vrot.slane %v2103_v40, %v2111_v18 }
 0x33e   :  { %v1809_v31 = vpop.f32.mrf.mxu1 }
 0x33f   :  { %v1810_v37 = vadd.f32 %v1809_v31, %v1769_v30  ;;  %v2120_v30 = vrot.slane %v2103_v40, %v2119_v19 }
 0x340   :  { %v3274_v38 = vpop.f32.mrf.mxu1 }
 0x341   :  { %v1814_v41 = vmax.f32 %v1810_v37, 0.0 }
 0x343   :  { %v1815_v49 = vpack.c.bf16 %v1814_v41, %v1813_v39 }
 0x345   :  { %2042 = vmatmul.mubr.bf16.vlgmr.msra.gmra.mxu0 %v1815_v49  ;;  %2085 = vmatmul.mubr.bf16.vlgmr.msra.gmra.mxu1 %v1815_v49 }
 0x346   :  { %3175 = vmatpush3.bf16.msra.mxu0 %v3556_v56  ;;  %3197 = vmatpush3.bf16.msra.mxu1 %v3557_v57 }
 0x347   :  { %3176 = vmatprep.subr.bf16.mxu0 %v3558_v58  ;;  %3198 = vmatprep.subr.bf16.mxu1 %v3559_v59 }
 0x34a   :  { %3177 = vmatpush3.bf16.msra.mxu0 %v3560_v60  ;;  %3199 = vmatpush3.bf16.msra.mxu1 %v3561_v61 }
 0x34b   :  { %3178 = vmatprep.subr.bf16.mxu0 %v3562_v62  ;;  %3200 = vmatprep.subr.bf16.mxu1 %v3563_v63 }
 0x34e   :  { %3179 = vmatpush3.bf16.msra.mxu0 %v3564_v1  ;;  %3201 = vmatpush3.bf16.msra.mxu1 %v3565_v2 }
 0x34f   :  { %3180 = vmatprep.subr.bf16.mxu0 %v3566_v3  ;;  %3202 = vmatprep.subr.bf16.mxu1 %v3567_v4 }
 0x352   :  { %3181 = vmatpush3.bf16.msra.mxu0 %v3568_v5  ;;  %3203 = vmatpush3.bf16.msra.mxu1 %v3569_v6 }
 0x353   :  { %3182 = vmatprep.subr.bf16.mxu0 %v3570_v7  ;;  %3204 = vmatprep.subr.bf16.mxu1 %v3571_v8 }
 0x356   :  { %3183 = vmatpush3.bf16.msra.mxu0 %v3572_v9  ;;  %3205 = vmatpush3.bf16.msra.mxu1 %v3573_v10  ;;  %v3588_v9 = vld [vmem:[%s4824_s7 + $0x28] sm:$0xff]   ;;  %v3589_v10 = vld [vmem:[%s4824_s7 + $0x20] sm:$0xff]  }
 0x357   :  { %3184 = vmatprep.subr.bf16.mxu0 %v3574_v11  ;;  %3206 = vmatprep.subr.bf16.mxu1 %v3575_v42  ;;  %v3590_v11 = vld [vmem:[%s4824_s7 + $0x18] sm:$0xff]   ;;  %v3591_v42 = vld [vmem:[%s4824_s7 + $0x10] sm:$0xff]  }
 0x35a   :  { %3185 = vmatpush3.bf16.msra.mxu0 %v3576_v43  ;;  %3207 = vmatpush3.bf16.msra.mxu1 %v3577_v44  ;;  %v3592_v43 = vld [vmem:[%s4824_s7 + $0x8] sm:$0xff]   ;;  %v3593_v44 = vld [vmem:[%s4824_s7] sm:$0xff]  }
 0x35b   :  { %3186 = vmatprep.subr.bf16.mxu0 %v3578_v0  ;;  %3208 = vmatprep.subr.bf16.mxu1 %v3579_v45 }
 0x35e   :  { %3187 = vmatpush3.bf16.msra.mxu0 %v3580_v48  ;;  %3209 = vmatpush3.bf16.msra.mxu1 %v3581_v50  ;;  %v2936_v48 = vld [vmem:[%s4826_s6] ss:$0 sm:$0xff] }
 0x35f   :  { %3188 = vmatprep.subr.bf16.mxu0 %v3582_v53  ;;  %3210 = vmatprep.subr.bf16.mxu1 %v3583_v54 }
 0x362   :  { %3189 = vmatpush3.bf16.msra.mxu0 %v3584_v16  ;;  %3211 = vmatpush3.bf16.msra.mxu1 %v3585_v13 }
 0x363   :  { %3275 = vmatprep.subr.bf16.mxu0 %v3630_v36 }
 0x405   :  { %v2043_v22 = vpop.f32.mrf.mxu0  ;;  %v2086_v34 = vpop.f32.mrf.mxu1 }
 0x406   :  { %v2095_v21 = vadd.f32 %v2043_v22, %v4645_v46  ;;  %v2097_v24 = vadd.f32 %v2086_v34, %v4648_v47 }
 0x407   :  { %v2045_v26 = vpop.f32.mrf.mxu0  ;;  %v2088_v28 = vpop.f32.mrf.mxu1 }
 0x408   :  { %v2096_v33 = vadd.f32 %v2045_v26, %v4651_v51  ;;  %v2098_v29 = vadd.f32 %v2088_v28, %v4654_v52  ;;  %v2125_v38 = vadd.f32 %v2108_v23, %v2095_v21  ;;  %v2127_v39 = vadd.f32 %v2116_v25, %v2097_v24  ;;  %v2969_v26 = vld [vmem:[%s4827_s8] ss:$0 sm:$0xff] }
 0x409   :  { %v2047_v31 = vpop.f32.mrf.mxu0  ;;  %v2090_v37 = vpop.f32.mrf.mxu1 }
 0x40a   :  { %v2099_v41 = vadd.f32 %v2047_v31, %v4657_v55  ;;  %v2101_v46 = vadd.f32 %v2090_v37, %v4660_v12  ;;  %v2126_v47 = vadd.f32 %v2112_v27, %v2096_v33  ;;  %v2128_v49 = vadd.f32 %v2120_v30, %v2098_v29 }
 0x40b   :  { %v2049_v56 = vpop.f32.mrf.mxu0  ;;  %v2092_v57 = vpop.f32.mrf.mxu1  ;;  %v2133_v62 = vmax.f32 %v2125_v38, 0.0  ;;  %v2135_v63 = vmax.f32 %v2127_v39, 0.0 }
 0x40c   :  { %v2100_v58 = vadd.f32 %v2049_v56, %v4663_v17  ;;  %v2102_v51 = vadd.f32 %v2092_v57, %v4666_v14  ;;  %v2129_v59 = vadd.f32 %v2108_v23, %v2099_v41  ;;  %v2131_v60 = vadd.f32 %v2116_v25, %v2101_v46  ;;  %v3586_v17 = vld [vmem:[%s4824_s7 + $0x38] sm:$0xff]   ;;  %v3587_v14 = vld [vmem:[%s4824_s7 + $0x30] sm:$0xff]  }
 0x40d   :  { %v2134_v3 = vmax.f32 %v2126_v47, 0.0  ;;  %v2136_v55 = vmax.f32 %v2128_v49, 0.0  ;;  %v2606_v25 = vand.u32 127, %v2105_v20 }
 0x40e   :  { %v2130_v52 = vadd.f32 %v2112_v27, %v2100_v58  ;;  %v2132_v61 = vadd.f32 %v2120_v30, %v2102_v51  ;;  %v2137_v1 = vmax.f32 %v2129_v59, 0.0  ;;  %v2139_v2 = vmax.f32 %v2131_v60, 0.0 }
 0x40f   :  { %vm2614_vm2 = vcmp.eq.s32.totalorder %v2606_v25, 9  ;;  %vm2607_vm3 = vcmp.lt.s32.totalorder %v2606_v25, 9 }
 0x410   :  { %v2138_v4 = vmax.f32 %v2130_v52, 0.0  ;;  %v2140_v12 = vmax.f32 %v2132_v61, 0.0  ;;  %v2141_v5 = vpack.c.bf16 %v2137_v1, %v2133_v62  ;;  %v2143_v6 = vpack.c.bf16 %v2139_v2, %v2135_v63 }
 0x412   :  { %v2142_v7 = vpack.c.bf16 %v2138_v4, %v2134_v3  ;;  %v2144_v8 = vpack.c.bf16 %v2140_v12, %v2136_v55 }
 0x414   :  { %2440 = vmatprep.mubr.bf16.mxu0 %v2142_v7  ;;  %2481 = vmatprep.mubr.bf16.mxu1 %v2144_v8 }
 0x415   :  { %2441 = vmatmul.mubr.bf16.vlgmr.msra.gmra.mxu0 %v2141_v5  ;;  %2482 = vmatmul.mubr.bf16.vlgmr.msra.gmra.mxu1 %v2143_v6 }
 0x416   :  { %3276 = vmatpush3.bf16.msra.mxu0 %v3586_v17  ;;  %3291 = vmatprep.mubr.msk.bf16.mxu0 %vm3631_vm0, %v3630_v36 }
 0x417   :  { %3277 = vmatprep.subr.bf16.mxu0 %v3630_v36 }
 0x41a   :  { %3278 = vmatpush3.bf16.msra.mxu0 %v3587_v14 }
 0x41b   :  { %3279 = vmatprep.subr.bf16.mxu0 %v3630_v36 }
 0x41e   :  { %3280 = vmatpush3.bf16.msra.mxu0 %v3588_v9 }
 0x41f   :  { %3281 = vmatprep.subr.bf16.mxu0 %v3630_v36 }
 0x422   :  { %3282 = vmatpush3.bf16.msra.mxu0 %v3589_v10 }
 0x423   :  { %3283 = vmatprep.subr.bf16.mxu0 %v3630_v36 }
 0x426   :  { %3284 = vmatpush3.bf16.msra.mxu0 %v3590_v11 }
 0x427   :  { %3285 = vmatprep.subr.bf16.mxu0 %v3630_v36 }
 0x42a   :  { %3286 = vmatpush3.bf16.msra.mxu0 %v3591_v42 }
 0x42b   :  { %3287 = vmatprep.subr.bf16.mxu0 %v3630_v36 }
 0x42e   :  { %3288 = vmatpush3.bf16.msra.mxu0 %v3592_v43 }
 0x42f   :  { %3289 = vmatprep.subr.bf16.mxu0 %v3630_v36 }
 0x432   :  { %3290 = vmatpush3.bf16.msra.mxu0 %v3593_v44 }
 0x4d5   :  { %v3190_v0 = vpop.f32.mrf.mxu0  ;;  %v3212_v45 = vpop.f32.mrf.mxu1 }
 0x4d7   :  { %v3191_v50 = vpop.f32.mrf.mxu0  ;;  %v3213_v53 = vpop.f32.mrf.mxu1 }
 0x4d8   :  { %v3192_v54 = vadd.f32 %v3191_v50, %v3190_v0  ;;  %v3214_v36 = vadd.f32 %v3213_v53, %v3212_v45 }
 0x4d9   :  { %v3193_v16 = vpop.f32.mrf.mxu0  ;;  %v3215_v13 = vpop.f32.mrf.mxu1 }
 0x4da   :  { %v2443_v15 = vadd.f32 %v3192_v54, %v2936_v48 }
 0x4db   :  { %v3194_v32 = vpop.f32.mrf.mxu0  ;;  %v3216_v35 = vpop.f32.mrf.mxu1 }
 0x4dc   :  { %v3195_v40 = vadd.f32 %v3194_v32, %v3193_v16  ;;  %v2484_v18 = vadd.f32 %v3214_v36, %v2443_v15  ;;  %v3217_v22 = vadd.f32 %v3216_v35, %v3215_v13 }
 0x4de   :  { %v2446_v19 = vadd.f32 %v3195_v40, %v2936_v48  ;;  %v2490_v21 = vmax.f32 %v2484_v18, 0.0 }
 0x4e0   :  { %v2487_v34 = vadd.f32 %v3217_v22, %v2446_v19 }
 0x4e2   :  { %v2491_v23 = vmax.f32 %v2487_v34, 0.0 }
 0x4e4   :  { %v2492_v24 = vpack.c.bf16 %v2491_v23, %v2490_v21 }
 0x4e6   :  { %3292 = vmatmul.mubr.bf16.vlgmr.msra.gmra.mxu0 %v2492_v24 }
 0x5a6   :  { %v2598_v28 = vpop.f32.mrf.mxu0 }
 0x5a7   :  { %v2599_v33 = vadd.f32 %v2969_v26, %v2598_v28 }
 0x5a8   :  { %v3293_v27 = vpop.f32.mrf.mxu0 }
 0x5a9   :  { %v2615_v29 = vsel %vm2614_vm2, %v2599_v33, 0.0  ;;  %v2608_v30 = vsel %vm2607_vm3, %v2599_v33, 0.0 }
 0x5aa   :  { %2617 = vadd.xlane.f32.xlu1 %v2615_v29  ;;  %2610 = vadd.xlane.f32.xlu0 %v2608_v30  ;;  %v2601_v31 = vpop.f32.mrf.mxu0 }
 0x5ab   :  { %v2602_v37 = vadd.f32 %v2969_v26, %v2601_v31 }
 0x5ac   :  { %v3294_v38 = vpop.f32.mrf.mxu0 }
 0x5ad   :  { %v2616_v39 = vsel %vm2614_vm2, %v2602_v37, 0.0  ;;  %v2609_v41 = vsel %vm2607_vm3, %v2602_v37, 0.0 }
 0x5ae   :  { %2619 = vadd.xlane.f32.xlu1 %v2616_v39  ;;  %2612 = vadd.xlane.f32.xlu0 %v2609_v41 }
 0x633   :  { %v2618_v20 = vpop.xlane.xlu1 %2617  ;;  %v2611_v46 = vpop.xlane.xlu0 %2610 }
 0x634   :  { %v2621_v56 = vadd.f32 %v2618_v20, %v2599_v33  ;;  %v2623_v57 = vmul.f32 0.11111111, %v2611_v46 }
 0x636   :  { %v2625_v47 = vsub.f32 %v2621_v56, %v2623_v57 }
 0x637   :  { %v2620_v49 = vpop.xlane.xlu1 %2619  ;;  %v2613_v58 = vpop.xlane.xlu0 %2612 }
 0x638   :  { %2627 = vst [vmem:[%s4828_s9] sm:$0xff] %v2625_v47  ;;  %v2622_v51 = vadd.f32 %v2620_v49, %v2602_v37  ;;  %v2624_v59 = vmul.f32 0.11111111, %v2613_v58 }
 0x63a   :  { %v2626_v60 = vsub.f32 %v2622_v51, %v2624_v59 }
 0x63c   :  { %2628 = vst [vmem:[%s4828_s9 + $0x8] sm:$0xff] %v2626_v60 }

</bundles_post_ra>
